<compile_context>
chip_gen: v6e
topology: v6e:2x2x1
jax: 0.10.0
libtpu: 0.0.40
codegen_flags: <defaults>
</compile_context>

<pallas_src>
import functools

import numpy as np
import jax
import jax.numpy as jnp
from jax import lax
from jax.experimental import pallas as pl
from jax.experimental.pallas import tpu as pltpu


# ----------------------------------------------------------------------------
# Fused kernel: MHA + residual + LN1 + Conv1d(k=5) + ReLU + Conv1d(k=1)
#               + residual + LN2.  One chunk of BT sequences per grid step;
#               all dense math runs on flat (BT*S, D) slabs.
# ----------------------------------------------------------------------------
def _smoother_kernel(x_ref, mask_ref, kpm_ref,
                     wqkv_ref, bqkv_ref, wo_ref, bo_ref,
                     g1_ref, b1_ref, c1w_ref, c1b_ref,
                     c2w_ref, c2b_ref, g2_ref, b2_ref,
                     o_ref, *, nhead, bt, seq):
    eps = 1e-5
    f32, bf16 = jnp.float32, jnp.bfloat16
    BT, S = bt, seq

    x = x_ref[...]                                   # (R, D) f32, R = BT*S
    R, D = x.shape
    hd = D // nhead

    # -------- QKV projection: ONE bf16 (R,D)@(D,3D) matmul, f32 accumulate ----
    # (1/sqrt(hd) is pre-folded into the Q columns of wqkv/bqkv.)
    qkv = jnp.dot(x.astype(bf16), wqkv_ref[...],
                  preferred_element_type=f32) + bqkv_ref[...]
    q, k, v = qkv[:, :D], qkv[:, D:2 * D], qkv[:, 2 * D:]        # f32 (R, D)

    mask = mask_ref[...]                             # (S, S) shared additive mask

    # -------- attention scores for every (batch, head); ONE batched softmax ---
    score_blocks, bias_blocks = [], []
    for b in range(BT):                              # BT, nhead small & static
        rows = slice(b * S, (b + 1) * S)
        mb = mask + kpm_ref[b]                       # (S,S) + (1,S) -> (S,S)
        for h in range(nhead):
            sl = slice(h * hd, (h + 1) * hd)
            s_bh = lax.dot_general(                  # q_bh @ k_bh^T   (S, S)
                q[rows, sl].astype(bf16), k[rows, sl].astype(bf16),
                (((1,), (1,)), ((), ())), preferred_element_type=f32)
            score_blocks.append(s_bh)
            bias_blocks.append(mb)
    s_all = (jnp.concatenate(score_blocks, axis=0)
             + jnp.concatenate(bias_blocks, axis=0))             # (BT*nhead*S, S)
    s_all = s_all - jnp.max(s_all, axis=-1, keepdims=True)
    p_all = jnp.exp(s_all)
    p_all = p_all * pl.reciprocal(jnp.sum(p_all, axis=-1, keepdims=True),
                                  approx=True)                   # f32 probs

    # -------- PV + output projection, accumulated per head (no lane concat) ---
    attn_rows = []
    for b in range(BT):
        rows = slice(b * S, (b + 1) * S)
        attn_b = jnp.zeros((S, D), f32)
        for h in range(nhead):
            sl = slice(h * hd, (h + 1) * hd)
            blk = (b * nhead + h) * S
            p_bh = p_all[blk:blk + S].astype(bf16)               # (S, S)
            ctx = jnp.dot(p_bh, v[rows, sl].astype(bf16),
                          preferred_element_type=f32)            # (S, hd)
            attn_b = attn_b + jnp.dot(ctx.astype(bf16), wo_ref[h],
                                      preferred_element_type=f32)
        attn_rows.append(attn_b)
    attn = jnp.concatenate(attn_rows, axis=0) + bo_ref[...]      # (R, D)

    # -------- residual + LayerNorm1 (f32 elementwise) --------------------------
    # TODO(synk): dropout1/dropout2 are inference-mode identities here.
    s1 = x + attn
    mu = jnp.mean(s1, axis=-1, keepdims=True)
    var = jnp.mean((s1 - mu) ** 2, axis=-1, keepdims=True)
    n1 = (s1 - mu) * lax.rsqrt(var + eps) * g1_ref[...] + b1_ref[...]    # (R, D)

    # -------- Conv1d(D->dff, k=5, pad=2) as ONE (R,5D)@(5D,dff) matmul --------
    # Tap kk uses sequence offset off = kk-2.  Rows are batch-major flat, so a
    # global sublane roll by -off moves row (b*S+t) to (b*S+t+off); rows whose
    # shifted sequence position falls outside [0,S) (including batch-boundary
    # crossings) are zeroed, matching Conv1d's zero padding.
    t_seq = jnp.concatenate(
        [lax.broadcasted_iota(jnp.int32, (S, 1), 0)] * BT, axis=0)       # (R, 1)
    taps = []
    for kk in range(5):
        off = kk - 2
        if off == 0:
            taps.append(n1)
        else:
            xs = pltpu.roll(n1, shift=(-off) % R, axis=0)   # xs[r] = n1[(r+off)%R]
            valid = jnp.logical_and(t_seq + off >= 0, t_seq + off < S)
            taps.append(jnp.where(valid, xs, 0.0))
    xcat = jnp.concatenate(taps, axis=-1).astype(bf16)                   # (R, 5D)
    hidden = jnp.dot(xcat, c1w_ref[...],
                     preferred_element_type=f32) + c1b_ref[...]
    hidden = jnp.maximum(hidden, 0.0)                                    # (R, dff)

    # -------- Conv1d(dff->D, k=1) + residual + LayerNorm2 ---------------------
    y = jnp.dot(hidden.astype(bf16), c2w_ref[...],
                preferred_element_type=f32) + c2b_ref[...]
    s2 = n1 + y
    mu2 = jnp.mean(s2, axis=-1, keepdims=True)
    var2 = jnp.mean((s2 - mu2) ** 2, axis=-1, keepdims=True)
    # NOTE: D=32 < 128 lanes -> this is a masked store; use d_model % 128 == 0
    # at production sizes for full-lane vst.
    o_ref[...] = (s2 - mu2) * lax.rsqrt(var2 + eps) * g2_ref[...] + b2_ref[...]


# ----------------------------------------------------------------------------
# Wrapper
# ----------------------------------------------------------------------------
def smoother_forward(params, src, src_mask, src_key_padding_mask, nhead,
                     batch_tile=None):
    """src: (S, B, D) float32 (PyTorch nn.MultiheadAttention layout).
    src_mask: (S, S) additive float.  src_key_padding_mask: (B, S) bool
    (True = masked).  Returns (S, B, D)."""
    S, B, D = src.shape
    dff = params["c1b"].shape[-1]
    BT = B if batch_tile is None else batch_tile
    assert B % BT == 0, "batch_tile must divide B"

    # Batch-major flat rows.  The (S,B,D)<->(B,S,D) swaps stay in the XLA
    # wrapper (negligible at these sizes).
    # TODO(synk): at production sizes accept batch-major activations end-to-end
    # so these two transposes (full HBM read+write each) disappear.
    x = jnp.transpose(src, (1, 0, 2)).astype(jnp.float32).reshape(B * S, D)
    kpm_add = jnp.where(src_key_padding_mask, -1e9, 0.0).astype(jnp.float32)
    kpm_add = kpm_add.reshape(B, 1, S)                  # per-batch (1, S) bias
    src_mask = src_mask.astype(jnp.float32)             # shared (S, S)

    const2 = lambda i: (0, 0)
    const3 = lambda i: (0, 0, 0)
    rowblk = lambda i: (i, 0)

    # NOTE(v7x): at production D/dff, add pipeline_mode=pl.Buffered(1) to the
    # grid-invariant weight specs below to halve their resident VMEM.
    out = pl.pallas_call(
        functools.partial(_smoother_kernel, nhead=nhead, bt=BT, seq=S),
        out_shape=jax.ShapeDtypeStruct((B * S, D), jnp.float32),
        grid=(B // BT,),
        in_specs=[
            pl.BlockSpec((BT * S, D), rowblk),              # x rows (batch chunk)
            pl.BlockSpec((S, S), const2),                   # shared attn mask
            pl.BlockSpec((BT, 1, S), lambda i: (i, 0, 0)),  # key-padding bias
            pl.BlockSpec((D, 3 * D), const2),               # wqkv (bf16, Q pre-scaled)
            pl.BlockSpec((1, 3 * D), const2),               # bqkv
            pl.BlockSpec((nhead, D // nhead, D), const3),   # wo, head-major (bf16)
            pl.BlockSpec((1, D), const2),                   # bo
            pl.BlockSpec((1, D), const2),                   # g1
            pl.BlockSpec((1, D), const2),                   # b1
            pl.BlockSpec((5 * D, dff), const2),             # conv1 w (bf16, tap-major)
            pl.BlockSpec((1, dff), const2),                 # conv1 bias
            pl.BlockSpec((dff, D), const2),                 # conv2 w (bf16)
            pl.BlockSpec((1, D), const2),                   # conv2 bias
            pl.BlockSpec((1, D), const2),                   # g2
            pl.BlockSpec((1, D), const2),                   # b2
        ],
        out_specs=pl.BlockSpec((BT * S, D), rowblk),
        compiler_params=pltpu.CompilerParams(
            dimension_semantics=("parallel",),
            vmem_limit_bytes=32 * 1024 * 1024),
    )(x, src_mask, kpm_add,
      params["wqkv_t"], params["bqkv"], params["wo_h"], params["bo"],
      params["g1"], params["b1"], params["c1w_cat"], params["c1b"],
      params["c2w_t"], params["c2b"], params["g2"], params["b2"])

    return jnp.transpose(out.reshape(B, S, D), (1, 0, 2))               # (S, B, D)


# ----------------------------------------------------------------------------
# Deterministic parameter init (PyTorch shapes, stored pre-transposed/folded;
# matmul weights stored in bf16).
# ----------------------------------------------------------------------------
def init_params(key, d_model, nhead, dff):
    D = d_model
    hd = D // nhead
    ks = jax.random.split(key, 12)

    def rn(k, shape, scale):
        return (scale * jax.random.normal(k, shape)).astype(jnp.float32)

    in_proj_w = rn(ks[0], (3 * D, D), 1.0 / np.sqrt(D))     # torch in_proj_weight
    in_proj_b = rn(ks[1], (3 * D,), 0.02)
    out_w = rn(ks[2], (D, D), 1.0 / np.sqrt(D))             # torch out_proj.weight
    out_b = rn(ks[3], (D,), 0.02)
    c1w = rn(ks[4], (dff, D, 5), 1.0 / np.sqrt(5 * D))      # torch conv1.weight
    c1b = rn(ks[5], (dff,), 0.02)
    c2w = rn(ks[6], (D, dff, 1), 1.0 / np.sqrt(dff))        # torch conv2.weight
    c2b = rn(ks[7], (D,), 0.02)
    g1 = (jnp.ones((D,)) + rn(ks[8], (D,), 0.01)).astype(jnp.float32)
    b1 = rn(ks[9], (D,), 0.01)
    g2 = (jnp.ones((D,)) + rn(ks[10], (D,), 0.01)).astype(jnp.float32)
    b2 = rn(ks[11], (D,), 0.01)

    # Fold attention scale 1/sqrt(hd) into the Q block of the in-projection.
    qscale = jnp.concatenate([jnp.full((D,), 1.0 / np.sqrt(hd), jnp.float32),
                              jnp.ones((2 * D,), jnp.float32)])
    wqkv_t = in_proj_w.T * qscale[None, :]                  # (D, 3D): y = x @ W^T
    bqkv = in_proj_b * qscale

    bf16 = jnp.bfloat16
    return {
        # bf16 matmul weights (MXU-native); biases / LN params stay f32.
        "wqkv_t": wqkv_t.astype(bf16),                                   # (D, 3D)
        "bqkv": bqkv.reshape(1, 3 * D),
        "wo_h": out_w.T.reshape(nhead, hd, D).astype(bf16),              # head-major
        "bo": out_b.reshape(1, D),
        "c1w_cat": jnp.transpose(c1w, (2, 1, 0)).reshape(5 * D, dff).astype(bf16),
        "c1b": c1b.reshape(1, dff),
        "c2w_t": c2w[:, :, 0].T.astype(bf16),                            # (dff, D)
        "c2b": c2b.reshape(1, D),
        "g1": g1.reshape(1, D), "b1": b1.reshape(1, D),
        "g2": g2.reshape(1, D), "b2": b2.reshape(1, D),
    }


# ----------------------------------------------------------------------------
# Pure-JAX reference (same folded bf16 params; mirrors the kernel's mixed
# precision and PyTorch Smoother semantics).
# ----------------------------------------------------------------------------
def reference_forward(params, src, src_mask, kpm, nhead):
    S, B, D = src.shape
    hd = D // nhead
    bf16 = jnp.bfloat16
    x = jnp.transpose(src, (1, 0, 2)).astype(jnp.float32)    # (B, S, D)

    def mm(a, w):   # bf16 operands, f32 accumulate — matches the kernel
        return jnp.dot(a.astype(bf16), w, preferred_element_type=jnp.float32)

    # NOTE: 1/sqrt(hd) is already folded into wqkv_t/bqkv (Q block).
    qkv = mm(x, params["wqkv_t"]) + params["bqkv"][0]
    q, k, v = qkv[..., :D], qkv[..., D:2 * D], qkv[..., 2 * D:]
    split = lambda t: t.reshape(B, S, nhead, hd).transpose(0, 2, 1, 3)
    mask = (src_mask[None, None, :, :]
            + jnp.where(kpm, -1e9, 0.0)[:, None, None, :])
    s = jnp.einsum("bhqd,bhkd->bhqk", split(q).astype(bf16), split(k).astype(bf16),
                   preferred_element_type=jnp.float32) + mask
    p = jax.nn.softmax(s, axis=-1)
    ctx = jnp.einsum("bhqk,bhkd->bhqd", p.astype(bf16), split(v).astype(bf16),
                     preferred_element_type=jnp.float32)
    ctx = ctx.transpose(0, 2, 1, 3).reshape(B, S, D)
    wo_t = params["wo_h"].reshape(D, D)
    attn = mm(ctx, wo_t) + params["bo"][0]

    def ln(z, g, b):
        mu = jnp.mean(z, -1, keepdims=True)
        var = jnp.mean((z - mu) ** 2, -1, keepdims=True)
        return (z - mu) / jnp.sqrt(var + 1e-5) * g + b

    n1 = ln(x + attn, params["g1"][0], params["b1"][0])
    c1w = params["c1w_cat"].reshape(5, D, -1)
    xp = jnp.pad(n1, ((0, 0), (2, 2), (0, 0)))
    h = sum(mm(xp[:, kk:kk + S], c1w[kk]) for kk in range(5))
    h = jnp.maximum(h + params["c1b"][0], 0.0)
    y = mm(h, params["c2w_t"]) + params["c2b"][0]
    out = ln(n1 + y, params["g2"][0], params["b2"][0])
    return jnp.transpose(out, (1, 0, 2))


if __name__ == "__main__":
    d_model, nhead, dim_feedforward = 32, 4, 64
    S, B = 8, 2

    key = jax.random.PRNGKey(0)
    k_params, k_src = jax.random.split(key)
    params = init_params(k_params, d_model, nhead, dim_feedforward)

    src = jax.random.normal(k_src, (S, B, d_model), jnp.float32)   # PyTorch (S, B, D)
    src_mask = jnp.zeros((S, S), jnp.float32)                      # additive attn mask
    src_key_padding_mask = jnp.zeros((B, S), bool).at[1, S - 2:].set(True)

    out = smoother_forward(params, src, src_mask, src_key_padding_mask, nhead)
    out = jax.block_until_ready(out)

    ref = reference_forward(params, src, src_mask, src_key_padding_mask, nhead)
    assert out.shape == (S, B, d_model)
    if not jnp.allclose(out, ref, atol=2e-2, rtol=2e-2):
        err = jnp.max(jnp.abs(out - ref))
        raise AssertionError(
            f"Pallas Smoother output mismatch vs JAX reference (max abs err {err})")

    print("KERNEL_OK")
</pallas_src>

<mosaic_0001>
module attributes {stable_mosaic.version = 11 : i64} {
  func.func @_smoother_kernel(%arg0: i32, %arg1: memref<16x32xf32, #tpu.memory_space<vmem>>, %arg2: memref<8x8xf32, #tpu.memory_space<vmem>>, %arg3: memref<2x1x8xf32, #tpu.memory_space<vmem>>, %arg4: memref<32x96xbf16, #tpu.memory_space<vmem>>, %arg5: memref<1x96xf32, #tpu.memory_space<vmem>>, %arg6: memref<4x8x32xbf16, #tpu.memory_space<vmem>>, %arg7: memref<1x32xf32, #tpu.memory_space<vmem>>, %arg8: memref<1x32xf32, #tpu.memory_space<vmem>>, %arg9: memref<1x32xf32, #tpu.memory_space<vmem>>, %arg10: memref<160x64xbf16, #tpu.memory_space<vmem>>, %arg11: memref<1x64xf32, #tpu.memory_space<vmem>>, %arg12: memref<64x32xbf16, #tpu.memory_space<vmem>>, %arg13: memref<1x32xf32, #tpu.memory_space<vmem>>, %arg14: memref<1x32xf32, #tpu.memory_space<vmem>>, %arg15: memref<1x32xf32, #tpu.memory_space<vmem>>, %arg16: memref<16x32xf32, #tpu.memory_space<vmem>>) attributes {dimension_semantics = [#tpu.dimension_semantics<parallel>], iteration_bounds = array<i64: 1>, scalar_prefetch = 0 : i64, scratch_operands = 0 : i64, tpu.core_type = #tpu.core_type<tc>, window_params = [{transform_indices = @transform_0, window_bounds = array<i64: 16, 32>}, {pipeline_mode = #tpu.pipeline_mode<synchronous>, transform_indices = @transform_1, window_bounds = array<i64: 8, 8>}, {transform_indices = @transform_2, window_bounds = array<i64: 2, 1, 8>}, {pipeline_mode = #tpu.pipeline_mode<synchronous>, transform_indices = @transform_3, window_bounds = array<i64: 32, 96>}, {pipeline_mode = #tpu.pipeline_mode<synchronous>, transform_indices = @transform_4, window_bounds = array<i64: 1, 96>}, {pipeline_mode = #tpu.pipeline_mode<synchronous>, transform_indices = @transform_5, window_bounds = array<i64: 4, 8, 32>}, {pipeline_mode = #tpu.pipeline_mode<synchronous>, transform_indices = @transform_6, window_bounds = array<i64: 1, 32>}, {pipeline_mode = #tpu.pipeline_mode<synchronous>, transform_indices = @transform_7, window_bounds = array<i64: 1, 32>}, {pipeline_mode = #tpu.pipeline_mode<synchronous>, transform_indices = @transform_8, window_bounds = array<i64: 1, 32>}, {pipeline_mode = #tpu.pipeline_mode<synchronous>, transform_indices = @transform_9, window_bounds = array<i64: 160, 64>}, {pipeline_mode = #tpu.pipeline_mode<synchronous>, transform_indices = @transform_10, window_bounds = array<i64: 1, 64>}, {pipeline_mode = #tpu.pipeline_mode<synchronous>, transform_indices = @transform_11, window_bounds = array<i64: 64, 32>}, {pipeline_mode = #tpu.pipeline_mode<synchronous>, transform_indices = @transform_12, window_bounds = array<i64: 1, 32>}, {pipeline_mode = #tpu.pipeline_mode<synchronous>, transform_indices = @transform_13, window_bounds = array<i64: 1, 32>}, {pipeline_mode = #tpu.pipeline_mode<synchronous>, transform_indices = @transform_14, window_bounds = array<i64: 1, 32>}, {transform_indices = @transform_15, window_bounds = array<i64: 16, 32>}]} {
    %c0 = arith.constant 0 : index
    %c0_0 = arith.constant 0 : index
    %0 = vector.load %arg1[%c0, %c0_0] : memref<16x32xf32, #tpu.memory_space<vmem>>, vector<16x32xf32>
    %1 = arith.truncf %0 : vector<16x32xf32> to vector<16x32xbf16>
    %c0_1 = arith.constant 0 : index
    %c0_2 = arith.constant 0 : index
    %2 = vector.load %arg4[%c0_1, %c0_2] : memref<32x96xbf16, #tpu.memory_space<vmem>>, vector<32x96xbf16>
    %cst = arith.constant dense<0.000000e+00> : vector<16x96xf32>
    %3 = tpu.matmul %1, %2, %cst {dimension_numbers = #tpu.dot_dimension_numbers<[1], [0], [0], [1], [0, 0, 1, 1], [], []>} : vector<16x32xbf16>, vector<32x96xbf16>, vector<16x96xf32> -> vector<16x96xf32>
    %c0_3 = arith.constant 0 : index
    %c0_4 = arith.constant 0 : index
    %4 = vector.load %arg5[%c0_3, %c0_4] : memref<1x96xf32, #tpu.memory_space<vmem>>, vector<1x96xf32>
    %5 = vector.broadcast %4 : vector<1x96xf32> to vector<16x96xf32>
    %6 = arith.addf %3, %5 : vector<16x96xf32>
    %7 = vector.extract_strided_slice %6 {offsets = [0, 0], sizes = [16, 32], strides = [1, 1]} : vector<16x96xf32> to vector<16x32xf32>
    %8 = vector.extract_strided_slice %6 {offsets = [0, 32], sizes = [16, 32], strides = [1, 1]} : vector<16x96xf32> to vector<16x32xf32>
    %9 = vector.extract_strided_slice %6 {offsets = [0, 64], sizes = [16, 32], strides = [1, 1]} : vector<16x96xf32> to vector<16x32xf32>
    %c0_5 = arith.constant 0 : index
    %c0_6 = arith.constant 0 : index
    %10 = vector.load %arg2[%c0_5, %c0_6] : memref<8x8xf32, #tpu.memory_space<vmem>>, vector<8x8xf32>
    %c0_7 = arith.constant 0 : index
    %c0_8 = arith.constant 0 : index
    %c0_9 = arith.constant 0 : index
    %11 = vector.load %arg3[%c0_7, %c0_8, %c0_9] : memref<2x1x8xf32, #tpu.memory_space<vmem>>, vector<1x1x8xf32>
    %12 = vector.shape_cast %11 : vector<1x1x8xf32> to vector<1x8xf32>
    %13 = vector.broadcast %12 : vector<1x8xf32> to vector<8x8xf32>
    %14 = arith.addf %10, %13 : vector<8x8xf32>
    %15 = vector.extract_strided_slice %7 {offsets = [0, 0], sizes = [8, 8], strides = [1, 1]} : vector<16x32xf32> to vector<8x8xf32>
    %16 = arith.truncf %15 : vector<8x8xf32> to vector<8x8xbf16>
    %17 = vector.extract_strided_slice %8 {offsets = [0, 0], sizes = [8, 8], strides = [1, 1]} : vector<16x32xf32> to vector<8x8xf32>
    %18 = arith.truncf %17 : vector<8x8xf32> to vector<8x8xbf16>
    %cst_10 = arith.constant dense<0.000000e+00> : vector<8x8xf32>
    %19 = tpu.matmul %16, %18, %cst_10 {dimension_numbers = #tpu.dot_dimension_numbers<[1], [1], [0], [0], [0, 0, 1, 0], [], []>} : vector<8x8xbf16>, vector<8x8xbf16>, vector<8x8xf32> -> vector<8x8xf32>
    %20 = vector.extract_strided_slice %7 {offsets = [0, 8], sizes = [8, 8], strides = [1, 1]} : vector<16x32xf32> to vector<8x8xf32>
    %21 = arith.truncf %20 : vector<8x8xf32> to vector<8x8xbf16>
    %22 = vector.extract_strided_slice %8 {offsets = [0, 8], sizes = [8, 8], strides = [1, 1]} : vector<16x32xf32> to vector<8x8xf32>
    %23 = arith.truncf %22 : vector<8x8xf32> to vector<8x8xbf16>
    %cst_11 = arith.constant dense<0.000000e+00> : vector<8x8xf32>
    %24 = tpu.matmul %21, %23, %cst_11 {dimension_numbers = #tpu.dot_dimension_numbers<[1], [1], [0], [0], [0, 0, 1, 0], [], []>} : vector<8x8xbf16>, vector<8x8xbf16>, vector<8x8xf32> -> vector<8x8xf32>
    %25 = vector.extract_strided_slice %7 {offsets = [0, 16], sizes = [8, 8], strides = [1, 1]} : vector<16x32xf32> to vector<8x8xf32>
    %26 = arith.truncf %25 : vector<8x8xf32> to vector<8x8xbf16>
    %27 = vector.extract_strided_slice %8 {offsets = [0, 16], sizes = [8, 8], strides = [1, 1]} : vector<16x32xf32> to vector<8x8xf32>
    %28 = arith.truncf %27 : vector<8x8xf32> to vector<8x8xbf16>
    %cst_12 = arith.constant dense<0.000000e+00> : vector<8x8xf32>
    %29 = tpu.matmul %26, %28, %cst_12 {dimension_numbers = #tpu.dot_dimension_numbers<[1], [1], [0], [0], [0, 0, 1, 0], [], []>} : vector<8x8xbf16>, vector<8x8xbf16>, vector<8x8xf32> -> vector<8x8xf32>
    %30 = vector.extract_strided_slice %7 {offsets = [0, 24], sizes = [8, 8], strides = [1, 1]} : vector<16x32xf32> to vector<8x8xf32>
    %31 = arith.truncf %30 : vector<8x8xf32> to vector<8x8xbf16>
    %32 = vector.extract_strided_slice %8 {offsets = [0, 24], sizes = [8, 8], strides = [1, 1]} : vector<16x32xf32> to vector<8x8xf32>
    %33 = arith.truncf %32 : vector<8x8xf32> to vector<8x8xbf16>
    %cst_13 = arith.constant dense<0.000000e+00> : vector<8x8xf32>
    %34 = tpu.matmul %31, %33, %cst_13 {dimension_numbers = #tpu.dot_dimension_numbers<[1], [1], [0], [0], [0, 0, 1, 0], [], []>} : vector<8x8xbf16>, vector<8x8xbf16>, vector<8x8xf32> -> vector<8x8xf32>
    %c1 = arith.constant 1 : index
    %c0_14 = arith.constant 0 : index
    %c0_15 = arith.constant 0 : index
    %35 = vector.load %arg3[%c1, %c0_14, %c0_15] : memref<2x1x8xf32, #tpu.memory_space<vmem>>, vector<1x1x8xf32>
    %36 = vector.shape_cast %35 : vector<1x1x8xf32> to vector<1x8xf32>
    %37 = vector.broadcast %36 : vector<1x8xf32> to vector<8x8xf32>
    %38 = arith.addf %10, %37 : vector<8x8xf32>
    %39 = vector.extract_strided_slice %7 {offsets = [8, 0], sizes = [8, 8], strides = [1, 1]} : vector<16x32xf32> to vector<8x8xf32>
    %40 = arith.truncf %39 : vector<8x8xf32> to vector<8x8xbf16>
    %41 = vector.extract_strided_slice %8 {offsets = [8, 0], sizes = [8, 8], strides = [1, 1]} : vector<16x32xf32> to vector<8x8xf32>
    %42 = arith.truncf %41 : vector<8x8xf32> to vector<8x8xbf16>
    %cst_16 = arith.constant dense<0.000000e+00> : vector<8x8xf32>
    %43 = tpu.matmul %40, %42, %cst_16 {dimension_numbers = #tpu.dot_dimension_numbers<[1], [1], [0], [0], [0, 0, 1, 0], [], []>} : vector<8x8xbf16>, vector<8x8xbf16>, vector<8x8xf32> -> vector<8x8xf32>
    %44 = vector.extract_strided_slice %7 {offsets = [8, 8], sizes = [8, 8], strides = [1, 1]} : vector<16x32xf32> to vector<8x8xf32>
    %45 = arith.truncf %44 : vector<8x8xf32> to vector<8x8xbf16>
    %46 = vector.extract_strided_slice %8 {offsets = [8, 8], sizes = [8, 8], strides = [1, 1]} : vector<16x32xf32> to vector<8x8xf32>
    %47 = arith.truncf %46 : vector<8x8xf32> to vector<8x8xbf16>
    %cst_17 = arith.constant dense<0.000000e+00> : vector<8x8xf32>
    %48 = tpu.matmul %45, %47, %cst_17 {dimension_numbers = #tpu.dot_dimension_numbers<[1], [1], [0], [0], [0, 0, 1, 0], [], []>} : vector<8x8xbf16>, vector<8x8xbf16>, vector<8x8xf32> -> vector<8x8xf32>
    %49 = vector.extract_strided_slice %7 {offsets = [8, 16], sizes = [8, 8], strides = [1, 1]} : vector<16x32xf32> to vector<8x8xf32>
    %50 = arith.truncf %49 : vector<8x8xf32> to vector<8x8xbf16>
    %51 = vector.extract_strided_slice %8 {offsets = [8, 16], sizes = [8, 8], strides = [1, 1]} : vector<16x32xf32> to vector<8x8xf32>
    %52 = arith.truncf %51 : vector<8x8xf32> to vector<8x8xbf16>
    %cst_18 = arith.constant dense<0.000000e+00> : vector<8x8xf32>
    %53 = tpu.matmul %50, %52, %cst_18 {dimension_numbers = #tpu.dot_dimension_numbers<[1], [1], [0], [0], [0, 0, 1, 0], [], []>} : vector<8x8xbf16>, vector<8x8xbf16>, vector<8x8xf32> -> vector<8x8xf32>
    %54 = vector.extract_strided_slice %7 {offsets = [8, 24], sizes = [8, 8], strides = [1, 1]} : vector<16x32xf32> to vector<8x8xf32>
    %55 = arith.truncf %54 : vector<8x8xf32> to vector<8x8xbf16>
    %56 = vector.extract_strided_slice %8 {offsets = [8, 24], sizes = [8, 8], strides = [1, 1]} : vector<16x32xf32> to vector<8x8xf32>
    %57 = arith.truncf %56 : vector<8x8xf32> to vector<8x8xbf16>
    %cst_19 = arith.constant dense<0.000000e+00> : vector<8x8xf32>
    %58 = tpu.matmul %55, %57, %cst_19 {dimension_numbers = #tpu.dot_dimension_numbers<[1], [1], [0], [0], [0, 0, 1, 0], [], []>} : vector<8x8xbf16>, vector<8x8xbf16>, vector<8x8xf32> -> vector<8x8xf32>
    %59 = tpu.concatenate %19, %24, %29, %34, %43, %48, %53, %58 in 0 : vector<8x8xf32>, vector<8x8xf32>, vector<8x8xf32>, vector<8x8xf32>, vector<8x8xf32>, vector<8x8xf32>, vector<8x8xf32>, vector<8x8xf32> -> vector<64x8xf32>
    %60 = tpu.concatenate %14, %14, %14, %14, %38, %38, %38, %38 in 0 : vector<8x8xf32>, vector<8x8xf32>, vector<8x8xf32>, vector<8x8xf32>, vector<8x8xf32>, vector<8x8xf32>, vector<8x8xf32>, vector<8x8xf32> -> vector<64x8xf32>
    %61 = arith.addf %59, %60 : vector<64x8xf32>
    %cst_20 = arith.constant dense<0xFF800000> : vector<64xf32>
    %62 = vector.multi_reduction <maximumf>, %61, %cst_20 [1] : vector<64x8xf32> to vector<64xf32>
    %63 = vector.shape_cast %62 : vector<64xf32> to vector<64x1xf32>
    %64 = vector.broadcast %63 : vector<64x1xf32> to vector<64x8xf32>
    %65 = arith.subf %61, %64 : vector<64x8xf32>
    %66 = math.exp %65 : vector<64x8xf32>
    %cst_21 = arith.constant dense<0.000000e+00> : vector<64xf32>
    %67 = vector.multi_reduction <add>, %66, %cst_21 [1] : vector<64x8xf32> to vector<64xf32>
    %68 = vector.shape_cast %67 : vector<64xf32> to vector<64x1xf32>
    %69 = tpu.reciprocal %68 {approx = true} : vector<64x1xf32> -> vector<64x1xf32>
    %70 = vector.broadcast %69 : vector<64x1xf32> to vector<64x8xf32>
    %71 = arith.mulf %66, %70 : vector<64x8xf32>
    %cst_22 = arith.constant 0.000000e+00 : f32
    %72 = vector.broadcast %cst_22 : f32 to vector<8x32xf32>
    %73 = vector.extract_strided_slice %71 {offsets = [0, 0], sizes = [8, 8], strides = [1, 1]} : vector<64x8xf32> to vector<8x8xf32>
    %74 = arith.truncf %73 : vector<8x8xf32> to vector<8x8xbf16>
    %75 = vector.extract_strided_slice %9 {offsets = [0, 0], sizes = [8, 8], strides = [1, 1]} : vector<16x32xf32> to vector<8x8xf32>
    %76 = arith.truncf %75 : vector<8x8xf32> to vector<8x8xbf16>
    %cst_23 = arith.constant dense<0.000000e+00> : vector<8x8xf32>
    %77 = tpu.matmul %74, %76, %cst_23 {dimension_numbers = #tpu.dot_dimension_numbers<[1], [0], [0], [1], [0, 0, 1, 1], [], []>} : vector<8x8xbf16>, vector<8x8xbf16>, vector<8x8xf32> -> vector<8x8xf32>
    %78 = arith.truncf %77 : vector<8x8xf32> to vector<8x8xbf16>
    %c0_24 = arith.constant 0 : index
    %c0_25 = arith.constant 0 : index
    %c0_26 = arith.constant 0 : index
    %79 = vector.load %arg6[%c0_24, %c0_25, %c0_26] : memref<4x8x32xbf16, #tpu.memory_space<vmem>>, vector<1x8x32xbf16>
    %80 = vector.shape_cast %79 : vector<1x8x32xbf16> to vector<8x32xbf16>
    %cst_27 = arith.constant dense<0.000000e+00> : vector<8x32xf32>
    %81 = tpu.matmul %78, %80, %cst_27 {dimension_numbers = #tpu.dot_dimension_numbers<[1], [0], [0], [1], [0, 0, 1, 1], [], []>} : vector<8x8xbf16>, vector<8x32xbf16>, vector<8x32xf32> -> vector<8x32xf32>
    %82 = arith.addf %72, %81 : vector<8x32xf32>
    %83 = vector.extract_strided_slice %71 {offsets = [8, 0], sizes = [8, 8], strides = [1, 1]} : vector<64x8xf32> to vector<8x8xf32>
    %84 = arith.truncf %83 : vector<8x8xf32> to vector<8x8xbf16>
    %85 = vector.extract_strided_slice %9 {offsets = [0, 8], sizes = [8, 8], strides = [1, 1]} : vector<16x32xf32> to vector<8x8xf32>
    %86 = arith.truncf %85 : vector<8x8xf32> to vector<8x8xbf16>
    %cst_28 = arith.constant dense<0.000000e+00> : vector<8x8xf32>
    %87 = tpu.matmul %84, %86, %cst_28 {dimension_numbers = #tpu.dot_dimension_numbers<[1], [0], [0], [1], [0, 0, 1, 1], [], []>} : vector<8x8xbf16>, vector<8x8xbf16>, vector<8x8xf32> -> vector<8x8xf32>
    %88 = arith.truncf %87 : vector<8x8xf32> to vector<8x8xbf16>
    %c1_29 = arith.constant 1 : index
    %c0_30 = arith.constant 0 : index
    %c0_31 = arith.constant 0 : index
    %89 = vector.load %arg6[%c1_29, %c0_30, %c0_31] : memref<4x8x32xbf16, #tpu.memory_space<vmem>>, vector<1x8x32xbf16>
    %90 = vector.shape_cast %89 : vector<1x8x32xbf16> to vector<8x32xbf16>
    %cst_32 = arith.constant dense<0.000000e+00> : vector<8x32xf32>
    %91 = tpu.matmul %88, %90, %cst_32 {dimension_numbers = #tpu.dot_dimension_numbers<[1], [0], [0], [1], [0, 0, 1, 1], [], []>} : vector<8x8xbf16>, vector<8x32xbf16>, vector<8x32xf32> -> vector<8x32xf32>
    %92 = arith.addf %82, %91 : vector<8x32xf32>
    %93 = vector.extract_strided_slice %71 {offsets = [16, 0], sizes = [8, 8], strides = [1, 1]} : vector<64x8xf32> to vector<8x8xf32>
    %94 = arith.truncf %93 : vector<8x8xf32> to vector<8x8xbf16>
    %95 = vector.extract_strided_slice %9 {offsets = [0, 16], sizes = [8, 8], strides = [1, 1]} : vector<16x32xf32> to vector<8x8xf32>
    %96 = arith.truncf %95 : vector<8x8xf32> to vector<8x8xbf16>
    %cst_33 = arith.constant dense<0.000000e+00> : vector<8x8xf32>
    %97 = tpu.matmul %94, %96, %cst_33 {dimension_numbers = #tpu.dot_dimension_numbers<[1], [0], [0], [1], [0, 0, 1, 1], [], []>} : vector<8x8xbf16>, vector<8x8xbf16>, vector<8x8xf32> -> vector<8x8xf32>
    %98 = arith.truncf %97 : vector<8x8xf32> to vector<8x8xbf16>
    %c2 = arith.constant 2 : index
    %c0_34 = arith.constant 0 : index
    %c0_35 = arith.constant 0 : index
    %99 = vector.load %arg6[%c2, %c0_34, %c0_35] : memref<4x8x32xbf16, #tpu.memory_space<vmem>>, vector<1x8x32xbf16>
    %100 = vector.shape_cast %99 : vector<1x8x32xbf16> to vector<8x32xbf16>
    %cst_36 = arith.constant dense<0.000000e+00> : vector<8x32xf32>
    %101 = tpu.matmul %98, %100, %cst_36 {dimension_numbers = #tpu.dot_dimension_numbers<[1], [0], [0], [1], [0, 0, 1, 1], [], []>} : vector<8x8xbf16>, vector<8x32xbf16>, vector<8x32xf32> -> vector<8x32xf32>
    %102 = arith.addf %92, %101 : vector<8x32xf32>
    %103 = vector.extract_strided_slice %71 {offsets = [24, 0], sizes = [8, 8], strides = [1, 1]} : vector<64x8xf32> to vector<8x8xf32>
    %104 = arith.truncf %103 : vector<8x8xf32> to vector<8x8xbf16>
    %105 = vector.extract_strided_slice %9 {offsets = [0, 24], sizes = [8, 8], strides = [1, 1]} : vector<16x32xf32> to vector<8x8xf32>
    %106 = arith.truncf %105 : vector<8x8xf32> to vector<8x8xbf16>
    %cst_37 = arith.constant dense<0.000000e+00> : vector<8x8xf32>
    %107 = tpu.matmul %104, %106, %cst_37 {dimension_numbers = #tpu.dot_dimension_numbers<[1], [0], [0], [1], [0, 0, 1, 1], [], []>} : vector<8x8xbf16>, vector<8x8xbf16>, vector<8x8xf32> -> vector<8x8xf32>
    %108 = arith.truncf %107 : vector<8x8xf32> to vector<8x8xbf16>
    %c3 = arith.constant 3 : index
    %c0_38 = arith.constant 0 : index
    %c0_39 = arith.constant 0 : index
    %109 = vector.load %arg6[%c3, %c0_38, %c0_39] : memref<4x8x32xbf16, #tpu.memory_space<vmem>>, vector<1x8x32xbf16>
    %110 = vector.shape_cast %109 : vector<1x8x32xbf16> to vector<8x32xbf16>
    %cst_40 = arith.constant dense<0.000000e+00> : vector<8x32xf32>
    %111 = tpu.matmul %108, %110, %cst_40 {dimension_numbers = #tpu.dot_dimension_numbers<[1], [0], [0], [1], [0, 0, 1, 1], [], []>} : vector<8x8xbf16>, vector<8x32xbf16>, vector<8x32xf32> -> vector<8x32xf32>
    %112 = arith.addf %102, %111 : vector<8x32xf32>
    %cst_41 = arith.constant 0.000000e+00 : f32
    %113 = vector.broadcast %cst_41 : f32 to vector<8x32xf32>
    %114 = vector.extract_strided_slice %71 {offsets = [32, 0], sizes = [8, 8], strides = [1, 1]} : vector<64x8xf32> to vector<8x8xf32>
    %115 = arith.truncf %114 : vector<8x8xf32> to vector<8x8xbf16>
    %116 = vector.extract_strided_slice %9 {offsets = [8, 0], sizes = [8, 8], strides = [1, 1]} : vector<16x32xf32> to vector<8x8xf32>
    %117 = arith.truncf %116 : vector<8x8xf32> to vector<8x8xbf16>
    %cst_42 = arith.constant dense<0.000000e+00> : vector<8x8xf32>
    %118 = tpu.matmul %115, %117, %cst_42 {dimension_numbers = #tpu.dot_dimension_numbers<[1], [0], [0], [1], [0, 0, 1, 1], [], []>} : vector<8x8xbf16>, vector<8x8xbf16>, vector<8x8xf32> -> vector<8x8xf32>
    %119 = arith.truncf %118 : vector<8x8xf32> to vector<8x8xbf16>
    %c0_43 = arith.constant 0 : index
    %c0_44 = arith.constant 0 : index
    %c0_45 = arith.constant 0 : index
    %120 = vector.load %arg6[%c0_43, %c0_44, %c0_45] : memref<4x8x32xbf16, #tpu.memory_space<vmem>>, vector<1x8x32xbf16>
    %121 = vector.shape_cast %120 : vector<1x8x32xbf16> to vector<8x32xbf16>
    %cst_46 = arith.constant dense<0.000000e+00> : vector<8x32xf32>
    %122 = tpu.matmul %119, %121, %cst_46 {dimension_numbers = #tpu.dot_dimension_numbers<[1], [0], [0], [1], [0, 0, 1, 1], [], []>} : vector<8x8xbf16>, vector<8x32xbf16>, vector<8x32xf32> -> vector<8x32xf32>
    %123 = arith.addf %113, %122 : vector<8x32xf32>
    %124 = vector.extract_strided_slice %71 {offsets = [40, 0], sizes = [8, 8], strides = [1, 1]} : vector<64x8xf32> to vector<8x8xf32>
    %125 = arith.truncf %124 : vector<8x8xf32> to vector<8x8xbf16>
    %126 = vector.extract_strided_slice %9 {offsets = [8, 8], sizes = [8, 8], strides = [1, 1]} : vector<16x32xf32> to vector<8x8xf32>
    %127 = arith.truncf %126 : vector<8x8xf32> to vector<8x8xbf16>
    %cst_47 = arith.constant dense<0.000000e+00> : vector<8x8xf32>
    %128 = tpu.matmul %125, %127, %cst_47 {dimension_numbers = #tpu.dot_dimension_numbers<[1], [0], [0], [1], [0, 0, 1, 1], [], []>} : vector<8x8xbf16>, vector<8x8xbf16>, vector<8x8xf32> -> vector<8x8xf32>
    %129 = arith.truncf %128 : vector<8x8xf32> to vector<8x8xbf16>
    %c1_48 = arith.constant 1 : index
    %c0_49 = arith.constant 0 : index
    %c0_50 = arith.constant 0 : index
    %130 = vector.load %arg6[%c1_48, %c0_49, %c0_50] : memref<4x8x32xbf16, #tpu.memory_space<vmem>>, vector<1x8x32xbf16>
    %131 = vector.shape_cast %130 : vector<1x8x32xbf16> to vector<8x32xbf16>
    %cst_51 = arith.constant dense<0.000000e+00> : vector<8x32xf32>
    %132 = tpu.matmul %129, %131, %cst_51 {dimension_numbers = #tpu.dot_dimension_numbers<[1], [0], [0], [1], [0, 0, 1, 1], [], []>} : vector<8x8xbf16>, vector<8x32xbf16>, vector<8x32xf32> -> vector<8x32xf32>
    %133 = arith.addf %123, %132 : vector<8x32xf32>
    %134 = vector.extract_strided_slice %71 {offsets = [48, 0], sizes = [8, 8], strides = [1, 1]} : vector<64x8xf32> to vector<8x8xf32>
    %135 = arith.truncf %134 : vector<8x8xf32> to vector<8x8xbf16>
    %136 = vector.extract_strided_slice %9 {offsets = [8, 16], sizes = [8, 8], strides = [1, 1]} : vector<16x32xf32> to vector<8x8xf32>
    %137 = arith.truncf %136 : vector<8x8xf32> to vector<8x8xbf16>
    %cst_52 = arith.constant dense<0.000000e+00> : vector<8x8xf32>
    %138 = tpu.matmul %135, %137, %cst_52 {dimension_numbers = #tpu.dot_dimension_numbers<[1], [0], [0], [1], [0, 0, 1, 1], [], []>} : vector<8x8xbf16>, vector<8x8xbf16>, vector<8x8xf32> -> vector<8x8xf32>
    %139 = arith.truncf %138 : vector<8x8xf32> to vector<8x8xbf16>
    %c2_53 = arith.constant 2 : index
    %c0_54 = arith.constant 0 : index
    %c0_55 = arith.constant 0 : index
    %140 = vector.load %arg6[%c2_53, %c0_54, %c0_55] : memref<4x8x32xbf16, #tpu.memory_space<vmem>>, vector<1x8x32xbf16>
    %141 = vector.shape_cast %140 : vector<1x8x32xbf16> to vector<8x32xbf16>
    %cst_56 = arith.constant dense<0.000000e+00> : vector<8x32xf32>
    %142 = tpu.matmul %139, %141, %cst_56 {dimension_numbers = #tpu.dot_dimension_numbers<[1], [0], [0], [1], [0, 0, 1, 1], [], []>} : vector<8x8xbf16>, vector<8x32xbf16>, vector<8x32xf32> -> vector<8x32xf32>
    %143 = arith.addf %133, %142 : vector<8x32xf32>
    %144 = vector.extract_strided_slice %71 {offsets = [56, 0], sizes = [8, 8], strides = [1, 1]} : vector<64x8xf32> to vector<8x8xf32>
    %145 = arith.truncf %144 : vector<8x8xf32> to vector<8x8xbf16>
    %146 = vector.extract_strided_slice %9 {offsets = [8, 24], sizes = [8, 8], strides = [1, 1]} : vector<16x32xf32> to vector<8x8xf32>
    %147 = arith.truncf %146 : vector<8x8xf32> to vector<8x8xbf16>
    %cst_57 = arith.constant dense<0.000000e+00> : vector<8x8xf32>
    %148 = tpu.matmul %145, %147, %cst_57 {dimension_numbers = #tpu.dot_dimension_numbers<[1], [0], [0], [1], [0, 0, 1, 1], [], []>} : vector<8x8xbf16>, vector<8x8xbf16>, vector<8x8xf32> -> vector<8x8xf32>
    %149 = arith.truncf %148 : vector<8x8xf32> to vector<8x8xbf16>
    %c3_58 = arith.constant 3 : index
    %c0_59 = arith.constant 0 : index
    %c0_60 = arith.constant 0 : index
    %150 = vector.load %arg6[%c3_58, %c0_59, %c0_60] : memref<4x8x32xbf16, #tpu.memory_space<vmem>>, vector<1x8x32xbf16>
    %151 = vector.shape_cast %150 : vector<1x8x32xbf16> to vector<8x32xbf16>
    %cst_61 = arith.constant dense<0.000000e+00> : vector<8x32xf32>
    %152 = tpu.matmul %149, %151, %cst_61 {dimension_numbers = #tpu.dot_dimension_numbers<[1], [0], [0], [1], [0, 0, 1, 1], [], []>} : vector<8x8xbf16>, vector<8x32xbf16>, vector<8x32xf32> -> vector<8x32xf32>
    %153 = arith.addf %143, %152 : vector<8x32xf32>
    %154 = tpu.concatenate %112, %153 in 0 : vector<8x32xf32>, vector<8x32xf32> -> vector<16x32xf32>
    %c0_62 = arith.constant 0 : index
    %c0_63 = arith.constant 0 : index
    %155 = vector.load %arg7[%c0_62, %c0_63] : memref<1x32xf32, #tpu.memory_space<vmem>>, vector<1x32xf32>
    %156 = vector.broadcast %155 : vector<1x32xf32> to vector<16x32xf32>
    %157 = arith.addf %154, %156 : vector<16x32xf32>
    %158 = arith.addf %0, %157 : vector<16x32xf32>
    %cst_64 = arith.constant dense<0.000000e+00> : vector<16xf32>
    %159 = vector.multi_reduction <add>, %158, %cst_64 [1] : vector<16x32xf32> to vector<16xf32>
    %160 = vector.shape_cast %159 : vector<16xf32> to vector<16x1xf32>
    %cst_65 = arith.constant 3.200000e+01 : f32
    %161 = vector.broadcast %cst_65 : f32 to vector<16x1xf32>
    %162 = arith.divf %160, %161 : vector<16x1xf32>
    %163 = vector.broadcast %162 : vector<16x1xf32> to vector<16x32xf32>
    %164 = arith.subf %158, %163 : vector<16x32xf32>
    %165 = arith.mulf %164, %164 : vector<16x32xf32>
    %cst_66 = arith.constant dense<0.000000e+00> : vector<16xf32>
    %166 = vector.multi_reduction <add>, %165, %cst_66 [1] : vector<16x32xf32> to vector<16xf32>
    %167 = vector.shape_cast %166 : vector<16xf32> to vector<16x1xf32>
    %cst_67 = arith.constant 3.200000e+01 : f32
    %168 = vector.broadcast %cst_67 : f32 to vector<16x1xf32>
    %169 = arith.divf %167, %168 : vector<16x1xf32>
    %170 = vector.broadcast %162 : vector<16x1xf32> to vector<16x32xf32>
    %171 = arith.subf %158, %170 : vector<16x32xf32>
    %cst_68 = arith.constant 9.99999974E-6 : f32
    %172 = vector.broadcast %cst_68 : f32 to vector<16x1xf32>
    %173 = arith.addf %169, %172 : vector<16x1xf32>
    %174 = math.rsqrt %173 : vector<16x1xf32>
    %175 = vector.broadcast %174 : vector<16x1xf32> to vector<16x32xf32>
    %176 = arith.mulf %171, %175 : vector<16x32xf32>
    %c0_69 = arith.constant 0 : index
    %c0_70 = arith.constant 0 : index
    %177 = vector.load %arg8[%c0_69, %c0_70] : memref<1x32xf32, #tpu.memory_space<vmem>>, vector<1x32xf32>
    %178 = vector.broadcast %177 : vector<1x32xf32> to vector<16x32xf32>
    %179 = arith.mulf %176, %178 : vector<16x32xf32>
    %c0_71 = arith.constant 0 : index
    %c0_72 = arith.constant 0 : index
    %180 = vector.load %arg9[%c0_71, %c0_72] : memref<1x32xf32, #tpu.memory_space<vmem>>, vector<1x32xf32>
    %181 = vector.broadcast %180 : vector<1x32xf32> to vector<16x32xf32>
    %182 = arith.addf %179, %181 : vector<16x32xf32>
    %183 = tpu.iota {dimensions = array<i32: 0>} : vector<8x1xi32>
    %184 = tpu.concatenate %183, %183 in 0 : vector<8x1xi32>, vector<8x1xi32> -> vector<16x1xi32>
    %c2_i32 = arith.constant 2 : i32
    %185 = tpu.dynamic_rotate %182 by %c2_i32 dim 0 : vector<16x32xf32>, i32 -> vector<16x32xf32>
    %c-2_i32 = arith.constant -2 : i32
    %186 = vector.broadcast %c-2_i32 : i32 to vector<16x1xi32>
    %187 = arith.addi %184, %186 : vector<16x1xi32>
    %c0_i32 = arith.constant 0 : i32
    %188 = vector.broadcast %c0_i32 : i32 to vector<16x1xi32>
    %189 = arith.cmpi sge, %187, %188 : vector<16x1xi32>
    %c-2_i32_73 = arith.constant -2 : i32
    %190 = vector.broadcast %c-2_i32_73 : i32 to vector<16x1xi32>
    %191 = arith.addi %184, %190 : vector<16x1xi32>
    %c8_i32 = arith.constant 8 : i32
    %192 = vector.broadcast %c8_i32 : i32 to vector<16x1xi32>
    %193 = arith.cmpi slt, %191, %192 : vector<16x1xi32>
    %194 = arith.andi %189, %193 : vector<16x1xi1>
    %cst_74 = arith.constant 0.000000e+00 : f32
    %195 = vector.shape_cast %194 : vector<16x1xi1> to vector<16x1xi1>
    %196 = vector.broadcast %195 : vector<16x1xi1> to vector<16x32xi1>
    %197 = vector.broadcast %cst_74 : f32 to vector<16x32xf32>
    %198 = arith.select %196, %185, %197 : vector<16x32xi1>, vector<16x32xf32>
    %c1_i32 = arith.constant 1 : i32
    %199 = tpu.dynamic_rotate %182 by %c1_i32 dim 0 : vector<16x32xf32>, i32 -> vector<16x32xf32>
    %c-1_i32 = arith.constant -1 : i32
    %200 = vector.broadcast %c-1_i32 : i32 to vector<16x1xi32>
    %201 = arith.addi %184, %200 : vector<16x1xi32>
    %c0_i32_75 = arith.constant 0 : i32
    %202 = vector.broadcast %c0_i32_75 : i32 to vector<16x1xi32>
    %203 = arith.cmpi sge, %201, %202 : vector<16x1xi32>
    %c-1_i32_76 = arith.constant -1 : i32
    %204 = vector.broadcast %c-1_i32_76 : i32 to vector<16x1xi32>
    %205 = arith.addi %184, %204 : vector<16x1xi32>
    %c8_i32_77 = arith.constant 8 : i32
    %206 = vector.broadcast %c8_i32_77 : i32 to vector<16x1xi32>
    %207 = arith.cmpi slt, %205, %206 : vector<16x1xi32>
    %208 = arith.andi %203, %207 : vector<16x1xi1>
    %cst_78 = arith.constant 0.000000e+00 : f32
    %209 = vector.shape_cast %208 : vector<16x1xi1> to vector<16x1xi1>
    %210 = vector.broadcast %209 : vector<16x1xi1> to vector<16x32xi1>
    %211 = vector.broadcast %cst_78 : f32 to vector<16x32xf32>
    %212 = arith.select %210, %199, %211 : vector<16x32xi1>, vector<16x32xf32>
    %c15_i32 = arith.constant 15 : i32
    %213 = tpu.dynamic_rotate %182 by %c15_i32 dim 0 : vector<16x32xf32>, i32 -> vector<16x32xf32>
    %c1_i32_79 = arith.constant 1 : i32
    %214 = vector.broadcast %c1_i32_79 : i32 to vector<16x1xi32>
    %215 = arith.addi %184, %214 : vector<16x1xi32>
    %c0_i32_80 = arith.constant 0 : i32
    %216 = vector.broadcast %c0_i32_80 : i32 to vector<16x1xi32>
    %217 = arith.cmpi sge, %215, %216 : vector<16x1xi32>
    %c1_i32_81 = arith.constant 1 : i32
    %218 = vector.broadcast %c1_i32_81 : i32 to vector<16x1xi32>
    %219 = arith.addi %184, %218 : vector<16x1xi32>
    %c8_i32_82 = arith.constant 8 : i32
    %220 = vector.broadcast %c8_i32_82 : i32 to vector<16x1xi32>
    %221 = arith.cmpi slt, %219, %220 : vector<16x1xi32>
    %222 = arith.andi %217, %221 : vector<16x1xi1>
    %cst_83 = arith.constant 0.000000e+00 : f32
    %223 = vector.shape_cast %222 : vector<16x1xi1> to vector<16x1xi1>
    %224 = vector.broadcast %223 : vector<16x1xi1> to vector<16x32xi1>
    %225 = vector.broadcast %cst_83 : f32 to vector<16x32xf32>
    %226 = arith.select %224, %213, %225 : vector<16x32xi1>, vector<16x32xf32>
    %c14_i32 = arith.constant 14 : i32
    %227 = tpu.dynamic_rotate %182 by %c14_i32 dim 0 : vector<16x32xf32>, i32 -> vector<16x32xf32>
    %c2_i32_84 = arith.constant 2 : i32
    %228 = vector.broadcast %c2_i32_84 : i32 to vector<16x1xi32>
    %229 = arith.addi %184, %228 : vector<16x1xi32>
    %c0_i32_85 = arith.constant 0 : i32
    %230 = vector.broadcast %c0_i32_85 : i32 to vector<16x1xi32>
    %231 = arith.cmpi sge, %229, %230 : vector<16x1xi32>
    %c2_i32_86 = arith.constant 2 : i32
    %232 = vector.broadcast %c2_i32_86 : i32 to vector<16x1xi32>
    %233 = arith.addi %184, %232 : vector<16x1xi32>
    %c8_i32_87 = arith.constant 8 : i32
    %234 = vector.broadcast %c8_i32_87 : i32 to vector<16x1xi32>
    %235 = arith.cmpi slt, %233, %234 : vector<16x1xi32>
    %236 = arith.andi %231, %235 : vector<16x1xi1>
    %cst_88 = arith.constant 0.000000e+00 : f32
    %237 = vector.shape_cast %236 : vector<16x1xi1> to vector<16x1xi1>
    %238 = vector.broadcast %237 : vector<16x1xi1> to vector<16x32xi1>
    %239 = vector.broadcast %cst_88 : f32 to vector<16x32xf32>
    %240 = arith.select %238, %227, %239 : vector<16x32xi1>, vector<16x32xf32>
    %241 = tpu.concatenate %198, %212, %182, %226, %240 in 1 : vector<16x32xf32>, vector<16x32xf32>, vector<16x32xf32>, vector<16x32xf32>, vector<16x32xf32> -> vector<16x160xf32>
    %242 = arith.truncf %241 : vector<16x160xf32> to vector<16x160xbf16>
    %c0_89 = arith.constant 0 : index
    %c0_90 = arith.constant 0 : index
    %243 = vector.load %arg10[%c0_89, %c0_90] : memref<160x64xbf16, #tpu.memory_space<vmem>>, vector<160x64xbf16>
    %cst_91 = arith.constant dense<0.000000e+00> : vector<16x64xf32>
    %244 = tpu.matmul %242, %243, %cst_91 {dimension_numbers = #tpu.dot_dimension_numbers<[1], [0], [0], [1], [0, 0, 1, 1], [], []>} : vector<16x160xbf16>, vector<160x64xbf16>, vector<16x64xf32> -> vector<16x64xf32>
    %c0_92 = arith.constant 0 : index
    %c0_93 = arith.constant 0 : index
    %245 = vector.load %arg11[%c0_92, %c0_93] : memref<1x64xf32, #tpu.memory_space<vmem>>, vector<1x64xf32>
    %246 = vector.broadcast %245 : vector<1x64xf32> to vector<16x64xf32>
    %247 = arith.addf %244, %246 : vector<16x64xf32>
    %cst_94 = arith.constant 0.000000e+00 : f32
    %248 = vector.broadcast %cst_94 : f32 to vector<16x64xf32>
    %249 = arith.maximumf %247, %248 : vector<16x64xf32>
    %250 = arith.truncf %249 : vector<16x64xf32> to vector<16x64xbf16>
    %c0_95 = arith.constant 0 : index
    %c0_96 = arith.constant 0 : index
    %251 = vector.load %arg12[%c0_95, %c0_96] : memref<64x32xbf16, #tpu.memory_space<vmem>>, vector<64x32xbf16>
    %cst_97 = arith.constant dense<0.000000e+00> : vector<16x32xf32>
    %252 = tpu.matmul %250, %251, %cst_97 {dimension_numbers = #tpu.dot_dimension_numbers<[1], [0], [0], [1], [0, 0, 1, 1], [], []>} : vector<16x64xbf16>, vector<64x32xbf16>, vector<16x32xf32> -> vector<16x32xf32>
    %c0_98 = arith.constant 0 : index
    %c0_99 = arith.constant 0 : index
    %253 = vector.load %arg13[%c0_98, %c0_99] : memref<1x32xf32, #tpu.memory_space<vmem>>, vector<1x32xf32>
    %254 = vector.broadcast %253 : vector<1x32xf32> to vector<16x32xf32>
    %255 = arith.addf %252, %254 : vector<16x32xf32>
    %256 = arith.addf %182, %255 : vector<16x32xf32>
    %cst_100 = arith.constant dense<0.000000e+00> : vector<16xf32>
    %257 = vector.multi_reduction <add>, %256, %cst_100 [1] : vector<16x32xf32> to vector<16xf32>
    %258 = vector.shape_cast %257 : vector<16xf32> to vector<16x1xf32>
    %cst_101 = arith.constant 3.200000e+01 : f32
    %259 = vector.broadcast %cst_101 : f32 to vector<16x1xf32>
    %260 = arith.divf %258, %259 : vector<16x1xf32>
    %261 = vector.broadcast %260 : vector<16x1xf32> to vector<16x32xf32>
    %262 = arith.subf %256, %261 : vector<16x32xf32>
    %263 = arith.mulf %262, %262 : vector<16x32xf32>
    %cst_102 = arith.constant dense<0.000000e+00> : vector<16xf32>
    %264 = vector.multi_reduction <add>, %263, %cst_102 [1] : vector<16x32xf32> to vector<16xf32>
    %265 = vector.shape_cast %264 : vector<16xf32> to vector<16x1xf32>
    %cst_103 = arith.constant 3.200000e+01 : f32
    %266 = vector.broadcast %cst_103 : f32 to vector<16x1xf32>
    %267 = arith.divf %265, %266 : vector<16x1xf32>
    %268 = vector.broadcast %260 : vector<16x1xf32> to vector<16x32xf32>
    %269 = arith.subf %256, %268 : vector<16x32xf32>
    %cst_104 = arith.constant 9.99999974E-6 : f32
    %270 = vector.broadcast %cst_104 : f32 to vector<16x1xf32>
    %271 = arith.addf %267, %270 : vector<16x1xf32>
    %272 = math.rsqrt %271 : vector<16x1xf32>
    %273 = vector.broadcast %272 : vector<16x1xf32> to vector<16x32xf32>
    %274 = arith.mulf %269, %273 : vector<16x32xf32>
    %c0_105 = arith.constant 0 : index
    %c0_106 = arith.constant 0 : index
    %275 = vector.load %arg14[%c0_105, %c0_106] : memref<1x32xf32, #tpu.memory_space<vmem>>, vector<1x32xf32>
    %276 = vector.broadcast %275 : vector<1x32xf32> to vector<16x32xf32>
    %277 = arith.mulf %274, %276 : vector<16x32xf32>
    %c0_107 = arith.constant 0 : index
    %c0_108 = arith.constant 0 : index
    %278 = vector.load %arg15[%c0_107, %c0_108] : memref<1x32xf32, #tpu.memory_space<vmem>>, vector<1x32xf32>
    %279 = vector.broadcast %278 : vector<1x32xf32> to vector<16x32xf32>
    %280 = arith.addf %277, %279 : vector<16x32xf32>
    %c0_109 = arith.constant 0 : index
    %c0_110 = arith.constant 0 : index
    %281 = vector.load %arg16[%c0_109, %c0_110] : memref<16x32xf32, #tpu.memory_space<vmem>>, vector<16x32xf32>
    tpu.vector_store %arg16[%c0_109, %c0_110], %280 {strides = array<i32>} : memref<16x32xf32, #tpu.memory_space<vmem>>, vector<16x32xf32>,
    return
  }
  func.func @transform_0(%arg0: i32) -> (i32, i32) {
    %c0_i32 = arith.constant 0 : i32
    %c0_i32_0 = arith.constant 0 : i32
    return %arg0, %c0_i32 : i32, i32
  }
  func.func @transform_1(%arg0: i32) -> (i32, i32) {
    %c0_i32 = arith.constant 0 : i32
    %c0_i32_0 = arith.constant 0 : i32
    %c0_i32_1 = arith.constant 0 : i32
    return %c0_i32, %c0_i32_0 : i32, i32
  }
  func.func @transform_2(%arg0: i32) -> (i32, i32, i32) {
    %c0_i32 = arith.constant 0 : i32
    %c0_i32_0 = arith.constant 0 : i32
    %c0_i32_1 = arith.constant 0 : i32
    return %arg0, %c0_i32, %c0_i32_0 : i32, i32, i32
  }
  func.func @transform_3(%arg0: i32) -> (i32, i32) {
    %c0_i32 = arith.constant 0 : i32
    %c0_i32_0 = arith.constant 0 : i32
    %c0_i32_1 = arith.constant 0 : i32
    return %c0_i32, %c0_i32_0 : i32, i32
  }
  func.func @transform_4(%arg0: i32) -> (i32, i32) {
    %c0_i32 = arith.constant 0 : i32
    %c0_i32_0 = arith.constant 0 : i32
    %c0_i32_1 = arith.constant 0 : i32
    return %c0_i32, %c0_i32_0 : i32, i32
  }
  func.func @transform_5(%arg0: i32) -> (i32, i32, i32) {
    %c0_i32 = arith.constant 0 : i32
    %c0_i32_0 = arith.constant 0 : i32
    %c0_i32_1 = arith.constant 0 : i32
    %c0_i32_2 = arith.constant 0 : i32
    return %c0_i32, %c0_i32_0, %c0_i32_1 : i32, i32, i32
  }
  func.func @transform_6(%arg0: i32) -> (i32, i32) {
    %c0_i32 = arith.constant 0 : i32
    %c0_i32_0 = arith.constant 0 : i32
    %c0_i32_1 = arith.constant 0 : i32
    return %c0_i32, %c0_i32_0 : i32, i32
  }
  func.func @transform_7(%arg0: i32) -> (i32, i32) {
    %c0_i32 = arith.constant 0 : i32
    %c0_i32_0 = arith.constant 0 : i32
    %c0_i32_1 = arith.constant 0 : i32
    return %c0_i32, %c0_i32_0 : i32, i32
  }
  func.func @transform_8(%arg0: i32) -> (i32, i32) {
    %c0_i32 = arith.constant 0 : i32
    %c0_i32_0 = arith.constant 0 : i32
    %c0_i32_1 = arith.constant 0 : i32
    return %c0_i32, %c0_i32_0 : i32, i32
  }
  func.func @transform_9(%arg0: i32) -> (i32, i32) {
    %c0_i32 = arith.constant 0 : i32
    %c0_i32_0 = arith.constant 0 : i32
    %c0_i32_1 = arith.constant 0 : i32
    return %c0_i32, %c0_i32_0 : i32, i32
  }
  func.func @transform_10(%arg0: i32) -> (i32, i32) {
    %c0_i32 = arith.constant 0 : i32
    %c0_i32_0 = arith.constant 0 : i32
    %c0_i32_1 = arith.constant 0 : i32
    return %c0_i32, %c0_i32_0 : i32, i32
  }
  func.func @transform_11(%arg0: i32) -> (i32, i32) {
    %c0_i32 = arith.constant 0 : i32
    %c0_i32_0 = arith.constant 0 : i32
    %c0_i32_1 = arith.constant 0 : i32
    return %c0_i32, %c0_i32_0 : i32, i32
  }
  func.func @transform_12(%arg0: i32) -> (i32, i32) {
    %c0_i32 = arith.constant 0 : i32
    %c0_i32_0 = arith.constant 0 : i32
    %c0_i32_1 = arith.constant 0 : i32
    return %c0_i32, %c0_i32_0 : i32, i32
  }
  func.func @transform_13(%arg0: i32) -> (i32, i32) {
    %c0_i32 = arith.constant 0 : i32
    %c0_i32_0 = arith.constant 0 : i32
    %c0_i32_1 = arith.constant 0 : i32
    return %c0_i32, %c0_i32_0 : i32, i32
  }
  func.func @transform_14(%arg0: i32) -> (i32, i32) {
    %c0_i32 = arith.constant 0 : i32
    %c0_i32_0 = arith.constant 0 : i32
    %c0_i32_1 = arith.constant 0 : i32
    return %c0_i32, %c0_i32_0 : i32, i32
  }
  func.func @transform_15(%arg0: i32) -> (i32, i32) {
    %c0_i32 = arith.constant 0 : i32
    %c0_i32_0 = arith.constant 0 : i32
    return %arg0, %c0_i32 : i32, i32
  }
}

</mosaic_0001>

<bundles_post_ra>
// kernel: tpu_custom_call.1
= control target key start
LH: loop header
LB: loop body
LE: loop exit
PB: predicated region body
PF: predicated region fallthrough
CT: control target
= control target key end

     0   :  { %v2233_v1 = vmov 0.0   ;;  %vm2234_vm0 = vmmov 0   ;;  %vm78_vm1 = vcmask 261120   ;;  %s2765_s0 = inlined_call_operand.vmem [shape: f32[16,32], index: 0, kind: input, shape index: {}]   ;;  %s2766_s1 = inlined_call_operand.vmem [shape: f32[8,8], index: 1, kind: input, shape index: {}]   ;;  %s2767_s2 = inlined_call_operand.vmem [shape: f32[2,1,8], index: 2, kind: input, shape index: {}]   ;;  %s2768_s3 = inlined_call_operand.vmem [shape: bf16[32,96], index: 3, kind: input, shape index: {}]   ;;  %s2769_s4 = inlined_call_operand.vmem [shape: f32[1,96], index: 4, kind: input, shape index: {}]   ;;  %s2770_s5 = inlined_call_operand.vmem [shape: bf16[4,8,32], index: 5, kind: input, shape index: {}]   ;;  %s2771_s6 = inlined_call_operand.vmem [shape: f32[1,32], index: 6, kind: input, shape index: {}]   ;;  %s2772_s7 = inlined_call_operand.vmem [shape: f32[1,32], index: 7, kind: input, shape index: {}]   ;;  %s2773_s8 = inlined_call_operand.vmem [shape: f32[1,32], index: 8, kind: input, shape index: {}]   ;;  %s2774_s9 = inlined_call_operand.vmem [shape: bf16[160,64], index: 9, kind: input, shape index: {}]   ;;  %s2775_s10 = inlined_call_operand.vmem [shape: f32[1,64], index: 10, kind: input, shape index: {}]   ;;  %s2776_s11 = inlined_call_operand.vmem [shape: bf16[64,32], index: 11, kind: input, shape index: {}]   ;;  %s2777_s12 = inlined_call_operand.vmem [shape: f32[1,32], index: 12, kind: input, shape index: {}]   ;;  %s2778_s13 = inlined_call_operand.vmem [shape: f32[1,32], index: 13, kind: input, shape index: {}]   ;;  %s2779_s14 = inlined_call_operand.vmem [shape: f32[1,32], index: 14, kind: input, shape index: {}]   ;;  %s2780_s15 = inlined_call_operand.hbm [shape: f32[16,32], index: 15, kind: output, shape index: {}]  }
   0x1   :  { %v2155_v0 = vld [vmem:[%s2768_s3 + $0x8] sm:$0xff]   ;;  %1956 = vmatprep.subr.bf16.mxu0 %v2233_v1  ;;  %1976 = vmatprep.subr.bf16.mxu1 %v2233_v1  ;;  %v2156_v2 = vld [vmem:[%s2768_s3] sm:$0xff]  }
   0x2   :  { %1957 = vmatpush3.bf16.msra.mxu0 %v2155_v0  ;;  %1960 = vmatprep.mubr.msk.bf16.mxu0 %vm2234_vm0, %v2233_v1  ;;  %v2344_v3 = vld [vmem:[%s2765_s0] sm:$0xff]  ;;  %v2349_v4 = vld [vmem:[%s2765_s0 + $0x8] sm:$0xff] }
   0x3   :  { %1958 = vmatprep.subr.bf16.mxu0 %v2233_v1  ;;  %1978 = vmatprep.mubr.msk.bf16.mxu1 %vm2234_vm0, %v2233_v1  ;;  %v54_v5 = vpack.c.bf16 %v2349_v4, %v2344_v3 }
   0x6   :  { %1959 = vmatpush3.bf16.msra.mxu0 %v2156_v2 }
   0x7   :  { %1964 = vmatprep.subr.bf16.mxu0 %v2233_v1 }
   0x9   :  { %1961 = vmatmul.mubr.msk.bf16.vlgmr.msra.gmra.mxu0 %vm78_vm1, %v54_v5 }
   0xa   :  { %1966 = vmatprep.mubr.msk.bf16.mxu0 %vm2234_vm0, %v2233_v1 }
   0xb   :  { %20 = vsyncpa [#allocation3], 0  ;;  %v1843_v6 = vld [vmem:[%s2769_s4] ss:$0 sm:$0xff]  ;;  %s2235_s26 = smov 120   ;;  %s2236_s27 = smov 96  }
   0xc   :  { %s2237_s28 = smov 80   ;;  %s2238_s4 = smov 88   ;;  %vm136_vm2 = vcmask 64512   ;;  %v2407_v28 = vld [vmem:[%s2766_s1] sm:$0xff]  ;;  %vm644_vm3 = vcmask 1043456  }
   0xd   :  { %s2239_s29 = smov 72   ;;  %s2240_s30 = smov 112   ;;  %v1847_v29 = vld [vmem:[%s2767_s2] ss:$0 sm:$0xff] }
   0xe   :  { %s2241_s16 = smov 104   ;;  %v131_v30 = vadd.f32 %v1847_v29, %v2407_v28  ;;  %s2242_s1 = smov 56  }
   0xf   :  { %s2243_s21 = smov 64   ;;  %s2244_s22 = smov 40  }
  0xc9   :  { %v116_v7 = vpop.f32.mrf.mxu0 }
  0xca   :  { %v117_v8 = vadd.f32 %v1843_v6, %v116_v7 }
  0xcb   :  { %v1962_v9 = vpop.f32.mrf.mxu0 }
  0xcc   :  { %v2363_v10 = vpack.c.bf16 %v117_v8, %v117_v8 }
  0xcd   :  { %v119_v11 = vpop.f32.mrf.mxu0 }
  0xce   :  { %183 = vrot.lane.b32.xlu1 %v2363_v10, %s2235_s26  ;;  %134 = vrot.lane.b32.xlu0 %v2363_v10, %s2236_s27  ;;  %v120_v13 = vadd.f32 %v1843_v6, %v119_v11 }
  0xcf   :  { %v1963_v12 = vpop.f32.mrf.mxu0 }
  0xd0   :  { %v2378_v14 = vpack.c.bf16 %v120_v13, %v120_v13 }
  0xd2   :  { %235 = vrot.lane.b32.xlu1 %v2363_v10, %s2237_s28  ;;  %185 = vrot.lane.b32.xlu0 %v2363_v10, %s2238_s4 }
  0xd6   :  { %285 = vrot.lane.b32.xlu1 %v2363_v10, %s2239_s29  ;;  %233 = vrot.lane.b32.xlu0 %v2363_v10, %s2240_s30 }
  0xda   :  { %283 = vrot.lane.b32.xlu0 %v2363_v10, %s2241_s16 }
  0xde   :  { %394 = vrot.lane.b32.xlu0 %v2378_v14, %s2238_s4 }
 0x140   :  { %v184_v15 = vpop.permute.xlu1 %183  ;;  %v135_v16 = vpop.permute.xlu0 %134 }
 0x141   :  { %v141_v17 = vsel %vm136_vm2, %v135_v16, 0 }
 0x142   :  { %1965 = vmatpush3.bf16.xpose.msra.mxu0 %v141_v17 }
 0x143   :  { %1970 = vmatprep.subr.bf16.mxu0 %v2233_v1 }
 0x144   :  { %v236_v18 = vpop.permute.xlu1 %235  ;;  %v186_v19 = vpop.permute.xlu0 %185 }
 0x145   :  { %v241_v20 = vsel %vm136_vm2, %v236_v18, 0  ;;  %v191_v21 = vsel %vm136_vm2, %v186_v19, 0  ;;  %v1853_v18 = vld [vmem:[%s2767_s2 + $0x1] ss:$0 sm:$0xff]  ;;  %s2245_s2 = smov 48  }
 0x146   :  { %1977 = vmatpush3.bf16.xpose.msra.mxu1 %v241_v20  ;;  %v2465_v19 = vadd.f32 %v1853_v18, %v2407_v28 }
 0x147   :  { %1988 = vmatprep.subr.bf16.mxu1 %v2233_v1 }
 0x148   :  { %v234_v22 = vpop.permute.xlu0 %233  ;;  %v286_v23 = vpop.permute.xlu1 %285 }
 0x149   :  { %1967 = vmatmul.mubr.msk.bf16.vlgmr.msra.gmra.mxu0 %vm136_vm2, %v2363_v10  ;;  %v291_v25 = vsel %vm136_vm2, %v286_v23, 0 }
 0x14a   :  { %1971 = vmatpush3.bf16.xpose.msra.mxu0 %v191_v21  ;;  %1972 = vmatprep.mubr.msk.bf16.mxu0 %vm2234_vm0, %v2233_v1 }
 0x14b   :  { %1982 = vmatprep.subr.bf16.mxu0 %v2233_v1 }
 0x14c   :  { %v284_v24 = vpop.permute.xlu0 %283 }
 0x14d   :  { %1979 = vmatmul.mubr.msk.bf16.vlgmr.msra.gmra.mxu1 %vm136_vm2, %v234_v22 }
 0x14e   :  { %1990 = vmatprep.mubr.msk.bf16.mxu1 %vm2234_vm0, %v2233_v1 }
 0x150   :  { %v395_v26 = vpop.permute.xlu0 %394 }
 0x151   :  { %1973 = vmatmul.mubr.msk.bf16.vlgmr.msra.gmra.mxu0 %vm136_vm2, %v184_v15  ;;  %v400_v27 = vsel %vm136_vm2, %v395_v26, 0 }
 0x152   :  { %1983 = vmatpush3.bf16.xpose.msra.mxu0 %v291_v25  ;;  %1984 = vmatprep.mubr.msk.bf16.mxu0 %vm2234_vm0, %v2233_v1 }
 0x153   :  { %1994 = vmatprep.subr.bf16.mxu0 %v2233_v1 }
 0x159   :  { %1985 = vmatmul.mubr.msk.bf16.vlgmr.msra.gmra.mxu0 %vm136_vm2, %v284_v24 }
 0x15a   :  { %1995 = vmatpush3.bf16.xpose.msra.mxu0 %v400_v27  ;;  %1996 = vmatprep.mubr.msk.bf16.mxu0 %vm2234_vm0, %v2233_v1 }
 0x15b   :  { %2006 = vmatprep.subr.bf16.mxu0 %v2233_v1 }
 0x209   :  { %v177_v31 = vpop.f32.mrf.mxu0 }
 0x20a   :  { %v2413_v32 = vadd.f32 %v177_v31, %v131_v30 }
 0x20b   :  { %v1968_v33 = vpop.f32.mrf.mxu0 }
 0x20c   :  { %v550_v6 = vsel %vm136_vm2, %v2413_v32, -inf }
 0x20d   :  { %v180_v34 = vpop.f32.mrf.mxu0  ;;  %v277_v35 = vpop.f32.mrf.mxu1 }
 0x20e   :  { %v544_v51 = vadd.f32 %v277_v35, %v131_v30 }
 0x20f   :  { %v1969_v36 = vpop.f32.mrf.mxu0  ;;  %v1980_v37 = vpop.f32.mrf.mxu1 }
 0x210   :  { %v556_v52 = vsel %vm136_vm2, %v544_v51, -inf }
 0x211   :  { %v227_v38 = vpop.f32.mrf.mxu0  ;;  %v280_v39 = vpop.f32.mrf.mxu1 }
 0x212   :  { %v543_v40 = vadd.f32 %v227_v38, %v131_v30 }
 0x213   :  { %v1974_v41 = vpop.f32.mrf.mxu0  ;;  %v1981_v42 = vpop.f32.mrf.mxu1 }
 0x214   :  { %v553_v43 = vsel %vm136_vm2, %v543_v40, -inf }
 0x215   :  { %554 = vmax.xlane.f32.xlu1 %v553_v43  ;;  %v230_v44 = vpop.f32.mrf.mxu0 }
 0x217   :  { %v1975_v45 = vpop.f32.mrf.mxu0 }
 0x219   :  { %v327_v46 = vpop.f32.mrf.mxu0 }
 0x21a   :  { %v2416_v47 = vadd.f32 %v327_v46, %v131_v30 }
 0x21b   :  { %v1986_v48 = vpop.f32.mrf.mxu0 }
 0x21c   :  { %v559_v7 = vsel %vm136_vm2, %v2416_v47, -inf }
 0x21d   :  { %v330_v49 = vpop.f32.mrf.mxu0 }
 0x21f   :  { %v1987_v50 = vpop.f32.mrf.mxu0 }
 0x226   :  { %392 = vrot.lane.b32.xlu1 %v2378_v14, %s2235_s26  ;;  %s2248_s26 = smov [#allocation2]  }
 0x22a   :  { %494 = vrot.lane.b32.xlu1 %v2378_v14, %s2239_s29 }
 0x22e   :  { %691 = vrot.lane.b32.xlu1 %v2363_v10, %s2242_s1 }
 0x252   :  { %557 = vmax.xlane.f32.xlu1 %v556_v52 }
 0x263   :  { %344 = vrot.lane.b32.xlu1 %v2378_v14, %s2236_s27 }
 0x29e   :  { %v555_v53 = vpop.xlane.xlu1 %554 }
 0x29f   :  { %v575_v54 = vsub.f32 %v543_v40, %v555_v53 }
 0x2a1   :  { %v584_v55 = vmul.f32 1.442695, %v575_v54 }
 0x2a2   :  { %v393_v56 = vpop.permute.xlu1 %392 }
 0x2a3   :  { %2171 = vpow2.f32 %v584_v55  ;;  %1997 = vmatmul.mubr.msk.bf16.vlgmr.msra.gmra.mxu0 %vm136_vm2, %v393_v56 }
 0x2a4   :  { %2008 = vmatprep.mubr.msk.bf16.mxu0 %vm2234_vm0, %v2233_v1 }
 0x2a6   :  { %v495_v57 = vpop.permute.xlu1 %494 }
 0x2a7   :  { %v500_v58 = vsel %vm136_vm2, %v495_v57, 0 }
 0x2a8   :  { %2007 = vmatpush3.bf16.xpose.msra.mxu0 %v500_v58 }
 0x2a9   :  { %2018 = vmatprep.subr.bf16.mxu0 %v2233_v1 }
 0x2aa   :  { %v692_v61 = vpop.permute.xlu1 %691 }
 0x2ab   :  { %v697_v13 = vsel %vm644_vm3, %v692_v61, 0 }
 0x2b0   :  { %v2172_v59 = vpop.eup %2171 }
 0x2b1   :  { %v601_v60 = vsel %vm136_vm2, %v2172_v59, 0.0 }
 0x2b2   :  { %602 = vadd.xlane.f32.xlu0 %v601_v60 }
 0x2c8   :  { %492 = vrot.lane.b32.xlu0 %v2378_v14, %s2241_s16 }
 0x2db   :  { %v558_v62 = vpop.xlane.xlu1 %557 }
 0x2dc   :  { %v576_v63 = vsub.f32 %v544_v51, %v558_v62 }
 0x2de   :  { %v586_v0 = vmul.f32 1.442695, %v576_v63 }
 0x2df   :  { %v345_v2 = vpop.permute.xlu1 %344 }
 0x2e0   :  { %2173 = vpow2.f32 %v586_v0  ;;  %v350_v5 = vsel %vm136_vm2, %v345_v2, 0  ;;  %v1860_v0 = vld [vmem:[%s2770_s5 + $0x4] sm:$0xf] }
 0x2e1   :  { %1989 = vmatpush3.bf16.xpose.msra.mxu1 %v350_v5  ;;  %v2503_v5 = vsel %vm644_vm3, %v1860_v0, 0 }
 0x2e2   :  { %2000 = vmatprep.subr.bf16.mxu1 %v2233_v1 }
 0x2e7   :  { %551 = vmax.xlane.f32.xlu0 %v550_v6 }
 0x2e8   :  { %1991 = vmatmul.mubr.msk.bf16.vlgmr.msra.gmra.mxu1 %vm136_vm2, %v2378_v14 }
 0x2e9   :  { %2002 = vmatprep.mubr.msk.bf16.mxu1 %vm2234_vm0, %v2233_v1 }
 0x2eb   :  { %560 = vmax.xlane.f32.xlu0 %v559_v7 }
 0x2ed   :  { %v2445_v8 = vpop.eup %2173 }
 0x2ee   :  { %v604_v9 = vsel %vm136_vm2, %v2445_v8, 0.0 }
 0x2ef   :  { %605 = vadd.xlane.f32.xlu1 %v604_v9 }
 0x300   :  { %639 = vrot.lane.b32.xlu1 %v2363_v10, %s2243_s21 }
 0x304   :  { %934 = vrot.lane.b32.xlu1 %v2363_v10, %s2244_s22 }
 0x33b   :  { %v603_v11 = vpop.xlane.xlu0 %602 }
 0x33c   :  { %2175 = vrcp.f32 %v603_v11 }
 0x33f   :  { %v493_v12 = vpop.permute.xlu0 %492 }
 0x340   :  { %2009 = vmatmul.mubr.msk.bf16.vlgmr.msra.gmra.mxu0 %vm136_vm2, %v493_v12 }
 0x341   :  { %2019 = vmatpush3.bf16.msra.mxu0 %v697_v13  ;;  %2020 = vmatprep.mubr.msk.bf16.mxu0 %vm2234_vm0, %v2233_v1 }
 0x342   :  { %2030 = vmatprep.subr.bf16.mxu0 %v2233_v1 }
 0x349   :  { %v2176_v15 = vpop.eup %2175 }
 0x34a   :  { %v631_v16 = vmul.f32 %v2176_v15, %v2172_v59 }
 0x34c   :  { %v690_v17 = vpack.c.bf16 %v631_v16, %v631_v16 }
 0x34e   :  { %2021 = vmatmul.mubr.msk.bf16.vlgmr.msra.gmra.mxu0 %vm136_vm2, %v690_v17 }
 0x34f   :  { %2032 = vmatprep.mubr.msk.bf16.mxu0 %vm2234_vm0, %v2233_v1 }
 0x363   :  { %v436_v20 = vpop.f32.mrf.mxu0 }
 0x364   :  { %v547_v21 = vadd.f32 %v436_v20, %v2465_v19  ;;  %v689_v20 = vld [vmem:[%s2770_s5] sm:$0xf] }
 0x365   :  { %v1998_v22 = vpop.f32.mrf.mxu0 }
 0x366   :  { %v565_v23 = vsel %vm136_vm2, %v547_v21, -inf }
 0x367   :  { %566 = vmax.xlane.f32.xlu1 %v565_v23  ;;  %v439_v24 = vpop.f32.mrf.mxu0 }
 0x369   :  { %v1999_v25 = vpop.f32.mrf.mxu0 }
 0x370   :  { %v552_v26 = vpop.xlane.xlu0 %551 }
 0x371   :  { %v574_v27 = vsub.f32 %v2413_v32, %v552_v26 }
 0x373   :  { %v582_v29 = vmul.f32 1.442695, %v574_v27 }
 0x374   :  { %v561_v31 = vpop.xlane.xlu0 %560 }
 0x375   :  { %2177 = vpow2.f32 %v582_v29  ;;  %v577_v33 = vsub.f32 %v2416_v47, %v561_v31 }
 0x377   :  { %v588_v34 = vmul.f32 1.442695, %v577_v33 }
 0x378   :  { %1083 = vrot.lane.b32.xlu1 %v2378_v14, %s2242_s1  ;;  %v606_v40 = vpop.xlane.xlu1 %605 }
 0x379   :  { %2179 = vpow2.f32 %v588_v34  ;;  %v1864_v34 = vld [vmem:[%s2770_s5 + $0x8] sm:$0xf] }
 0x37c   :  { %v640_v41 = vpop.permute.xlu1 %639 }
 0x37d   :  { %v646_v61 = vsel %vm644_vm3, %v640_v41, 0 }
 0x380   :  { %v935_v42 = vpop.permute.xlu1 %934 }
 0x381   :  { %v940_v16 = vsel %vm644_vm3, %v935_v42, 0 }
 0x382   :  { %v2178_v30 = vpop.eup %2177 }
 0x383   :  { %v598_v28 = vsel %vm136_vm2, %v2178_v30, 0.0 }
 0x384   :  { %599 = vadd.xlane.f32.xlu0 %v598_v28 }
 0x386   :  { %v2478_v38 = vpop.eup %2179 }
 0x387   :  { %v607_v39 = vsel %vm136_vm2, %v2478_v38, 0.0 }
 0x39a   :  { %444 = vrot.lane.b32.xlu0 %v2378_v14, %s2237_s28  ;;  %s1832_s28 = sshll.u32 %s2248_s26, 4  ;;  %s1833_s28 = int_to_ptr.vmem [resolvable:$true] %s1832_s28 }
 0x39b   :  { %s2211_s4 = scalar_lea.vmem %s1833_s28, 256  ;;  %p2216_p1 = scmp.lt.s32.totalorder %s1833_s28, %s1833_s28 }
 0x39c   :  { %p2212_p0 = scmp.ne.s32.totalorder %s1833_s28, %s2211_s4  ;;  %p2217_p2 = scmp.lt.s32.totalorder %s2211_s4, %s2211_s4 }
 0x39e   :  { %442 = vrot.lane.b32.xlu0 %v2378_v14, %s2240_s30  ;;  %p2218_p3 = por %p2217_p2, %p2216_p1 }
 0x3a0   :  { %p2219_p4 = pnand %p2218_p3, %p2212_p0 }
 0x3a8   :  { %v386_v32 = vpop.f32.mrf.mxu1 }
 0x3a9   :  { %v546_v49 = vadd.f32 %v386_v32, %v2465_v19 }
 0x3aa   :  { %v1992_v35 = vpop.f32.mrf.mxu1 }
 0x3ab   :  { %v562_v52 = vsel %vm136_vm2, %v546_v49, -inf }
 0x3ac   :  { %v389_v36 = vpop.f32.mrf.mxu1 }
 0x3ae   :  { %v1993_v37 = vpop.f32.mrf.mxu1 }
 0x3bd   :  { %608 = vadd.xlane.f32.xlu0 %v607_v39 }
 0x3d3   :  { %835 = vrot.lane.b32.xlu0 %v2363_v10, %s2245_s2 }
 0x3f0   :  { %v567_v43 = vpop.xlane.xlu1 %566 }
 0x3f1   :  { %v579_v44 = vsub.f32 %v547_v21, %v567_v43  ;;  %v2529_v21 = vsel %vm644_vm3, %v689_v20, 0 }
 0x3f2   :  { %2031 = vmatpush3.bf16.msra.mxu0 %v2529_v21 }
 0x3f3   :  { %v592_v45 = vmul.f32 1.442695, %v579_v44  ;;  %2042 = vmatprep.subr.bf16.mxu0 %v2233_v1 }
 0x3f5   :  { %2181 = vpow2.f32 %v592_v45 }
 0x400   :  { %v2484_v46 = vpop.f32.mrf.mxu0 }
 0x402   :  { %v2486_v47 = vpop.eup %2181  ;;  %v2010_v48 = vpop.f32.mrf.mxu0 }
 0x403   :  { %v613_v50 = vsel %vm136_vm2, %v2486_v47, 0.0 }
 0x404   :  { %614 = vadd.xlane.f32.xlu0 %v613_v50  ;;  %v539_v51 = vpop.f32.mrf.mxu0 }
 0x406   :  { %v2011_v10 = vpop.f32.mrf.mxu0 }
 0x408   :  { %563 = vmax.xlane.f32.xlu0 %v562_v52 }
 0x40d   :  { %v600_v53 = vpop.xlane.xlu0 %599 }
 0x40e   :  { %2183 = vrcp.f32 %v600_v53  ;;  %v733_v54 = vpop.f32.mrf.mxu0  ;;  %v1084_v53 = vpop.permute.xlu1 %1083 }
 0x40f   :  { %v739_v6 = vpack.c.bf16 %v733_v54, %v733_v54  ;;  %2185 = vrcp.f32 %v606_v40 }
 0x410   :  { %v2022_v55 = vpop.f32.mrf.mxu0 }
 0x411   :  { %v445_v56 = vpop.permute.xlu0 %444 }
 0x412   :  { %v450_v57 = vsel %vm136_vm2, %v445_v56, 0  ;;  %v736_v58 = vpop.f32.mrf.mxu0 }
 0x413   :  { %2001 = vmatpush3.bf16.xpose.msra.mxu1 %v450_v57  ;;  %v1089_v58 = vsel %vm644_vm3, %v1084_v53, 0 }
 0x414   :  { %v2023_v59 = vpop.f32.mrf.mxu0  ;;  %2012 = vmatprep.subr.bf16.mxu1 %v2233_v1 }
 0x415   :  { %v443_v60 = vpop.permute.xlu0 %442 }
 0x41a   :  { %2003 = vmatmul.mubr.msk.bf16.vlgmr.msra.gmra.mxu1 %vm136_vm2, %v443_v60 }
 0x41b   :  { %v2184_v62 = vpop.eup %2183  ;;  %2013 = vmatpush3.bf16.msra.mxu1 %v646_v61  ;;  %2014 = vmatprep.mubr.msk.bf16.mxu1 %vm2234_vm0, %v2233_v1 }
 0x41c   :  { %v630_v63 = vmul.f32 %v2184_v62, %v2178_v30  ;;  %2024 = vmatprep.subr.bf16.mxu1 %v2233_v1  ;;  %v2186_v7 = vpop.eup %2185  ;;  %v2536_v30 = vadd.f32 %v2484_v46, %v2465_v19  ;;  %v1867_v46 = vld [vmem:[%s2770_s5 + $0xc] sm:$0xf] }
 0x41d   :  { %v632_v11 = vmul.f32 %v2186_v7, %v2445_v8  ;;  %v2566_v50 = vsel %vm644_vm3, %v1867_v46, 0 }
 0x41e   :  { %v638_v2 = vpack.c.bf16 %v630_v63, %v630_v63  ;;  %v571_v32 = vsel %vm136_vm2, %v2536_v30, -inf }
 0x41f   :  { %v834_v15 = vpack.c.bf16 %v632_v11, %v632_v11 }
 0x422   :  { %2015 = vmatmul.mubr.msk.bf16.vlgmr.msra.gmra.mxu1 %vm136_vm2, %v638_v2 }
 0x423   :  { %2025 = vmatpush3.bf16.msra.mxu1 %v2503_v5  ;;  %2026 = vmatprep.mubr.msk.bf16.mxu1 %vm2234_vm0, %v2233_v1 }
 0x424   :  { %2036 = vmatprep.subr.bf16.mxu1 %v2233_v1 }
 0x42a   :  { %2027 = vmatmul.mubr.msk.bf16.vlgmr.msra.gmra.mxu1 %vm136_vm2, %v739_v6 }
 0x42b   :  { %2038 = vmatprep.mubr.msk.bf16.mxu1 %vm2234_vm0, %v2233_v1 }
 0x446   :  { %v609_v9 = vpop.xlane.xlu0 %608 }
 0x447   :  { %2187 = vrcp.f32 %v609_v9 }
 0x44a   :  { %v836_v12 = vpop.permute.xlu0 %835 }
 0x44b   :  { %v841_v13 = vsel %vm644_vm3, %v836_v12, 0 }
 0x44c   :  { %2037 = vmatpush3.bf16.msra.mxu1 %v841_v13 }
 0x44d   :  { %2048 = vmatprep.subr.bf16.mxu1 %v2233_v1 }
 0x44f   :  { %2039 = vmatmul.mubr.msk.bf16.vlgmr.msra.gmra.mxu1 %vm136_vm2, %v834_v15 }
 0x450   :  { %2049 = vmatpush3.bf16.msra.mxu1 %v940_v16  ;;  %2050 = vmatprep.mubr.msk.bf16.mxu1 %vm2234_vm0, %v2233_v1 }
 0x451   :  { %2060 = vmatprep.subr.bf16.mxu1 %v2233_v1 }
 0x454   :  { %v2188_v17 = vpop.eup %2187 }
 0x455   :  { %v633_v8 = vmul.f32 %v2188_v17, %v2478_v38 }
 0x457   :  { %v933_v18 = vpack.c.bf16 %v633_v8, %v633_v8 }
 0x459   :  { %2051 = vmatmul.mubr.msk.bf16.vlgmr.msra.gmra.mxu1 %vm136_vm2, %v933_v18 }
 0x45a   :  { %2062 = vmatprep.mubr.msk.bf16.mxu1 %vm2234_vm0, %v2233_v1 }
 0x48d   :  { %v615_v22 = vpop.xlane.xlu0 %614 }
 0x491   :  { %v564_v23 = vpop.xlane.xlu0 %563 }
 0x492   :  { %v578_v24 = vsub.f32 %v546_v49, %v564_v23 }
 0x494   :  { %v590_v25 = vmul.f32 1.442695, %v578_v24 }
 0x496   :  { %2189 = vpow2.f32 %v590_v25 }
 0x497   :  { %2191 = vrcp.f32 %v615_v22 }
 0x4a3   :  { %v2544_v35 = vpop.eup %2189 }
 0x4a4   :  { %v610_v39 = vsel %vm136_vm2, %v2544_v35, 0.0  ;;  %v2192_v56 = vpop.eup %2191 }
 0x4a5   :  { %v635_v60 = vmul.f32 %v2192_v56, %v2486_v47 }
 0x4a7   :  { %v1082_v62 = vpack.c.bf16 %v635_v60, %v635_v60 }
 0x4da   :  { %v486_v26 = vpop.f32.mrf.mxu1 }
 0x4db   :  { %v548_v27 = vadd.f32 %v486_v26, %v2465_v19  ;;  %v2547_v19 = vsel %vm644_vm3, %v1864_v34, 0 }
 0x4dc   :  { %v2004_v29 = vpop.f32.mrf.mxu1 }
 0x4dd   :  { %v568_v28 = vsel %vm136_vm2, %v548_v27, -inf }
 0x4de   :  { %v489_v31 = vpop.f32.mrf.mxu1  ;;  %569 = vmax.xlane.f32.xlu0 %v568_v28 }
 0x4df   :  { %v2601_v31 = vld [vmem:[%s2771_s6] ss:$0 sm:$0xff] }
 0x4e0   :  { %v2005_v33 = vpop.f32.mrf.mxu1 }
 0x4e2   :  { %v682_v36 = vpop.f32.mrf.mxu1  ;;  %572 = vmax.xlane.f32.xlu0 %v571_v32 }
 0x4e3   :  { %v688_v37 = vpack.c.bf16 %v682_v36, %v682_v36 }
 0x4e4   :  { %v2016_v38 = vpop.f32.mrf.mxu1 }
 0x4e5   :  { %2033 = vmatmul.mubr.msk.bf16.vlgmr.msra.gmra.mxu0 %vm136_vm2, %v688_v37 }
 0x4e6   :  { %v685_v40 = vpop.f32.mrf.mxu1  ;;  %611 = vadd.xlane.f32.xlu0 %v610_v39  ;;  %2043 = vmatpush3.bf16.msra.mxu0 %v2547_v19 }
 0x4e7   :  { %2044 = vmatprep.mubr.msk.bf16.mxu0 %vm2234_vm0, %v2233_v1  ;;  %2054 = vmatprep.subr.bf16.mxu0 %v2233_v1 }
 0x4e8   :  { %v2017_v41 = vpop.f32.mrf.mxu1 }
 0x4ea   :  { %v2556_v42 = vpop.f32.mrf.mxu1 }
 0x4ec   :  { %v2028_v43 = vpop.f32.mrf.mxu1 }
 0x4ee   :  { %v785_v44 = vpop.f32.mrf.mxu1 }
 0x4f0   :  { %v2029_v45 = vpop.f32.mrf.mxu1 }
 0x4fc   :  { %1033 = vrot.lane.b32.xlu0 %v2378_v14, %s2243_s21 }
 0x500   :  { %1219 = vrot.lane.b32.xlu0 %v2378_v14, %s2245_s2 }
 0x50f   :  { %v877_v48 = vpop.f32.mrf.mxu1 }
 0x510   :  { %v883_v49 = vpack.c.bf16 %v877_v48, %v877_v48 }
 0x511   :  { %v2040_v51 = vpop.f32.mrf.mxu1 }
 0x512   :  { %2045 = vmatmul.mubr.msk.bf16.vlgmr.msra.gmra.mxu0 %vm136_vm2, %v883_v49 }
 0x513   :  { %v880_v10 = vpop.f32.mrf.mxu1  ;;  %2055 = vmatpush3.bf16.msra.mxu0 %v2566_v50  ;;  %2056 = vmatprep.mubr.msk.bf16.mxu0 %vm2234_vm0, %v2233_v1 }
 0x514   :  { %2066 = vmatprep.subr.bf16.mxu0 %v2233_v1 }
 0x515   :  { %v2041_v52 = vpop.f32.mrf.mxu1 }
 0x519   :  { %v976_v54 = vpop.f32.mrf.mxu1 }
 0x51a   :  { %v982_v55 = vpack.c.bf16 %v976_v54, %v976_v54 }
 0x51b   :  { %v2052_v57 = vpop.f32.mrf.mxu1 }
 0x51c   :  { %2057 = vmatmul.mubr.msk.bf16.vlgmr.msra.gmra.mxu0 %vm136_vm2, %v982_v55 }
 0x51d   :  { %2067 = vmatpush3.bf16.msra.mxu0 %v1089_v58  ;;  %v979_v59 = vpop.f32.mrf.mxu1  ;;  %2068 = vmatprep.mubr.msk.bf16.mxu0 %vm2234_vm0, %v2233_v1 }
 0x51e   :  { %2078 = vmatprep.subr.bf16.mxu0 %v2233_v1 }
 0x51f   :  { %v2053_v61 = vpop.f32.mrf.mxu1 }
 0x524   :  { %2069 = vmatmul.mubr.msk.bf16.vlgmr.msra.gmra.mxu0 %vm136_vm2, %v1082_v62 }
 0x525   :  { %2079 = vmatpush3.bf16.msra.mxu0 %v2529_v21  ;;  %2080 = vmatprep.mubr.msk.bf16.mxu0 %vm2234_vm0, %v2233_v1 }
 0x526   :  { %2090 = vmatprep.subr.bf16.mxu0 %v2233_v1 }
 0x567   :  { %v570_v63 = vpop.xlane.xlu0 %569 }
 0x568   :  { %v580_v0 = vsub.f32 %v548_v27, %v570_v63 }
 0x56a   :  { %v594_v2 = vmul.f32 1.442695, %v580_v0 }
 0x56b   :  { %v573_v6 = vpop.xlane.xlu0 %572 }
 0x56c   :  { %2193 = vpow2.f32 %v594_v2  ;;  %v581_v47 = vsub.f32 %v2536_v30, %v573_v6 }
 0x56e   :  { %v596_v7 = vmul.f32 1.442695, %v581_v47 }
 0x56f   :  { %v612_v9 = vpop.xlane.xlu0 %611 }
 0x570   :  { %2195 = vpow2.f32 %v596_v7 }
 0x571   :  { %2197 = vrcp.f32 %v612_v9 }
 0x573   :  { %v1034_v11 = vpop.permute.xlu0 %1033 }
 0x574   :  { %v1039_v12 = vsel %vm644_vm3, %v1034_v11, 0 }
 0x575   :  { %2061 = vmatpush3.bf16.msra.mxu1 %v1039_v12 }
 0x576   :  { %2072 = vmatprep.subr.bf16.mxu1 %v2233_v1 }
 0x577   :  { %v1220_v38 = vpop.permute.xlu0 %1219 }
 0x579   :  { %v2194_v13 = vpop.eup %2193 }
 0x57a   :  { %v616_v15 = vsel %vm136_vm2, %v2194_v13, 0.0 }
 0x57b   :  { %617 = vadd.xlane.f32.xlu1 %v616_v15 }
 0x57d   :  { %v2196_v16 = vpop.eup %2195 }
 0x57e   :  { %v2198_v17 = vpop.eup %2197  ;;  %v619_v8 = vsel %vm136_vm2, %v2196_v16, 0.0 }
 0x57f   :  { %620 = vadd.xlane.f32.xlu0 %v619_v8  ;;  %v634_v18 = vmul.f32 %v2198_v17, %v2544_v35  ;;  %v2246_v8 = vmov 0  }
 0x580   :  { %2138 = vset.pattern.permute.xlu1 %v2246_v8  ;;  %2139 = vset.pattern.permute.xlu0 %v2246_v8 }
 0x581   :  { %v1032_v20 = vpack.c.bf16 %v634_v18, %v634_v18 }
 0x583   :  { %2063 = vmatmul.mubr.msk.bf16.vlgmr.msra.gmra.mxu1 %vm136_vm2, %v1032_v20 }
 0x584   :  { %2073 = vmatpush3.bf16.msra.mxu1 %v2503_v5  ;;  %2074 = vmatprep.mubr.msk.bf16.mxu1 %vm2234_vm0, %v2233_v1 }
 0x585   :  { %2084 = vmatprep.subr.bf16.mxu1 %v2233_v1 }
 0x595   :  { %1313 = vrot.lane.b32.xlu0 %v2378_v14, %s2244_s22 }
 0x5a5   :  { %v828_v21 = vpop.f32.mrf.mxu0 }
 0x5a6   :  { %v829_v30 = vadd.f32 %v828_v21, %v2556_v42  ;;  %v1225_v42 = vsel %vm644_vm3, %v1220_v38, 0  ;;  %v1462_v38 = vlaneseq }
 0x5a7   :  { %v2034_v22 = vpop.f32.mrf.mxu0 }
 0x5a9   :  { %v831_v23 = vpop.f32.mrf.mxu0 }
 0x5ab   :  { %v2035_v24 = vpop.f32.mrf.mxu0 }
 0x5d2   :  { %v926_v25 = vpop.f32.mrf.mxu0 }
 0x5d3   :  { %v932_v28 = vadd.f32 %v926_v25, %v829_v30 }
 0x5d4   :  { %v2046_v26 = vpop.f32.mrf.mxu0 }
 0x5d6   :  { %v929_v27 = vpop.f32.mrf.mxu0 }
 0x5d8   :  { %v2047_v29 = vpop.f32.mrf.mxu0 }
 0x5dc   :  { %v1025_v5 = vpop.f32.mrf.mxu0 }
 0x5dd   :  { %v1031_v33 = vadd.f32 %v1025_v5, %v932_v28 }
 0x5de   :  { %v2058_v34 = vpop.f32.mrf.mxu0 }
 0x5df   :  { %v1413_v14 = vadd.f32 %v2601_v31, %v1031_v33 }
 0x5e0   :  { %v1028_v32 = vpop.f32.mrf.mxu0 }
 0x5e1   :  { %v2605_v35 = vadd.f32 %v1413_v14, %v2344_v3 }
 0x5e2   :  { %v2059_v36 = vpop.f32.mrf.mxu0 }
 0x5e3   :  { %v1417_v37 = vsel %vm78_vm1, %v2605_v35, 0.0 }
 0x5e4   :  { %1418 = vadd.xlane.f32.xlu0 %v1417_v37  ;;  %v1125_v39 = vpop.f32.mrf.mxu0 }
 0x5e5   :  { %v1131_v40 = vpack.c.bf16 %v1125_v39, %v1125_v39  ;;  %v2644_v39 = vshrl.u32 %v1462_v38, 7 }
 0x5e6   :  { %v2070_v41 = vpop.f32.mrf.mxu0 }
 0x5e7   :  { %2075 = vmatmul.mubr.msk.bf16.vlgmr.msra.gmra.mxu1 %vm136_vm2, %v1131_v40  ;;  %vm1514_vm8 = vcmp.lt.s32.totalorder %v2644_v39, 6  ;;  %vm1498_vm9 = vcmp.lt.s32.totalorder %v2644_v39, 7  ;;  %vm1482_vm11 = vcmp.lt.s32.totalorder %v2644_v39, 1  ;;  %vm1466_vm14 = vcmp.lt.s32.totalorder %v2644_v39, 2 }
 0x5e8   :  { %2085 = vmatpush3.bf16.msra.mxu1 %v1225_v42  ;;  %v1128_v43 = vpop.f32.mrf.mxu0  ;;  %2086 = vmatprep.mubr.msk.bf16.mxu1 %vm2234_vm0, %v2233_v1 }
 0x5e9   :  { %2096 = vmatprep.subr.bf16.mxu1 %v2233_v1 }
 0x5ea   :  { %v2071_v3 = vpop.f32.mrf.mxu0 }
 0x604   :  { %v618_v44 = vpop.xlane.xlu1 %617 }
 0x605   :  { %2199 = vrcp.f32 %v618_v44 }
 0x608   :  { %v621_v45 = vpop.xlane.xlu0 %620 }
 0x609   :  { %2201 = vrcp.f32 %v621_v45  ;;  %v1501_v45 = vadd.s32 1, %v2644_v39 }
 0x60b   :  { %vm1503_vm6 = vcmp.lt.s32.totalorder %v1501_v45, 8 }
 0x60c   :  { %v1314_v49 = vpop.permute.xlu0 %1313 }
 0x60d   :  { %v1319_v52 = vsel %vm644_vm3, %v1314_v49, 0 }
 0x612   :  { %v2200_v46 = vpop.eup %2199 }
 0x613   :  { %v636_v48 = vmul.f32 %v2200_v46, %v2194_v13  ;;  %v1517_v46 = vadd.s32 2, %v2644_v39 }
 0x615   :  { %v1218_v51 = vpack.c.bf16 %v636_v48, %v636_v48  ;;  %v1505_v48 = vsel %vm1503_vm6, 1, %v2246_v8  ;;  %vm1519_vm7 = vcmp.lt.s32.totalorder %v1517_v46, 8 }
 0x616   :  { %v2202_v10 = vpop.eup %2201  ;;  %v1521_v49 = vsel %vm1519_vm7, 1, %v2246_v8 }
 0x617   :  { %2087 = vmatmul.mubr.msk.bf16.vlgmr.msra.gmra.mxu1 %vm136_vm2, %v1218_v51  ;;  %v637_v53 = vmul.f32 %v2202_v10, %v2196_v16  ;;  %v2157_v51 = vld [vmem:[%s2774_s9 + $0x38] sm:$0xff]   ;;  %v2158_v10 = vld [vmem:[%s2774_s9 + $0x30] sm:$0xff]  }
 0x618   :  { %2097 = vmatpush3.bf16.msra.mxu1 %v1319_v52  ;;  %2098 = vmatprep.mubr.msk.bf16.mxu1 %vm2234_vm0, %v2233_v1  ;;  %v2159_v52 = vld [vmem:[%s2774_s9 + $0x28] sm:$0xff]  }
 0x619   :  { %v1312_v54 = vpack.c.bf16 %v637_v53, %v637_v53  ;;  %1652 = vmatprep.subr.bf16.mxu1 %v2246_v8  ;;  %v2160_v53 = vld [vmem:[%s2774_s9 + $0x20] sm:$0xff]  }
 0x61f   :  { %2099 = vmatmul.mubr.msk.bf16.vlgmr.msra.gmra.mxu1 %vm136_vm2, %v1312_v54  ;;  %v2161_v54 = vld [vmem:[%s2774_s9 + $0x18] sm:$0xff]  }
 0x620   :  { %1653 = vmatpush1.bf16.msra.mxu1 %v2157_v51 }
 0x621   :  { %1654 = vmatprep.subr.bf16.mxu1 %v2246_v8 }
 0x624   :  { %1655 = vmatpush1.bf16.msra.mxu1 %v2158_v10 }
 0x625   :  { %1656 = vmatprep.subr.bf16.mxu1 %v2246_v8 }
 0x628   :  { %1657 = vmatpush1.bf16.msra.mxu1 %v2159_v52 }
 0x629   :  { %1658 = vmatprep.subr.bf16.mxu1 %v2246_v8 }
 0x62c   :  { %1659 = vmatpush1.bf16.msra.mxu1 %v2160_v53 }
 0x62d   :  { %1660 = vmatprep.subr.bf16.mxu1 %v2246_v8 }
 0x630   :  { %1661 = vmatpush1.bf16.msra.mxu1 %v2161_v54 }
 0x631   :  { %1662 = vmatprep.subr.bf16.mxu1 %v2246_v8 }
 0x643   :  { %v1075_v55 = vpop.f32.mrf.mxu1 }
 0x644   :  { %v1081_v56 = vpack.c.bf16 %v1075_v55, %v1075_v55  ;;  %v2162_v55 = vld [vmem:[%s2774_s9 + $0x10] sm:$0xff]  }
 0x645   :  { %v2064_v57 = vpop.f32.mrf.mxu1  ;;  %1663 = vmatpush1.bf16.msra.mxu1 %v2162_v55 }
 0x646   :  { %2081 = vmatmul.mubr.msk.bf16.vlgmr.msra.gmra.mxu0 %vm136_vm2, %v1081_v56  ;;  %v2163_v56 = vld [vmem:[%s2774_s9 + $0x8] sm:$0xff]   ;;  %1664 = vmatprep.subr.bf16.mxu1 %v2246_v8 }
 0x647   :  { %v1078_v58 = vpop.f32.mrf.mxu1  ;;  %2091 = vmatpush3.bf16.msra.mxu0 %v2547_v19  ;;  %2092 = vmatprep.mubr.msk.bf16.mxu0 %vm2234_vm0, %v2233_v1 }
 0x648   :  { %2102 = vmatprep.subr.bf16.mxu0 %v2233_v1 }
 0x649   :  { %v2065_v59 = vpop.f32.mrf.mxu1  ;;  %1665 = vmatpush1.bf16.msra.mxu1 %v2163_v56 }
 0x64a   :  { %1666 = vmatprep.subr.bf16.mxu1 %v2246_v8 }
 0x66d   :  { %v1419_v21 = vpop.xlane.xlu0 %1418 }
 0x66e   :  { %v1424_v25 = vmul.f32 0.03125, %v1419_v21 }
 0x670   :  { %v2636_v28 = vsub.f32 %v2605_v35, %v1424_v25  ;;  %v1485_v35 = vadd.s32 4294967295, %v2644_v39 }
 0x672   :  { %v1428_v36 = vmul.f32 %v2636_v28, %v2636_v28  ;;  %vm1486_vm4 = vcmp.ge.s32.totalorder %v1485_v35, 0 }
 0x674   :  { %v1430_v37 = vsel %vm78_vm1, %v1428_v36, 0.0 }
 0x6a7   :  { %v1169_v60 = vpop.f32.mrf.mxu1 }
 0x6a9   :  { %v2076_v61 = vpop.f32.mrf.mxu1 }
 0x6ab   :  { %v1172_v62 = vpop.f32.mrf.mxu1 }
 0x6ad   :  { %v2077_v63 = vpop.f32.mrf.mxu1 }
 0x6d7   :  { %v1261_v0 = vpop.f32.mrf.mxu1 }
 0x6d8   :  { %v1267_v2 = vpack.c.bf16 %v1261_v0, %v1261_v0 }
 0x6d9   :  { %v2088_v6 = vpop.f32.mrf.mxu1 }
 0x6da   :  { %2093 = vmatmul.mubr.msk.bf16.vlgmr.msra.gmra.mxu0 %vm136_vm2, %v1267_v2  ;;  %v1878_v6 = vld [vmem:[%s2772_s7] ss:$0 sm:$0xff] }
 0x6db   :  { %v1264_v47 = vpop.f32.mrf.mxu1  ;;  %2103 = vmatpush3.bf16.msra.mxu0 %v2566_v50  ;;  %2104 = vmatprep.mubr.msk.bf16.mxu0 %vm2234_vm0, %v2233_v1 }
 0x6dc   :  { %2108 = vmatprep.subr.bf16.mxu0 %v2233_v1  ;;  %v2164_v47 = vld [vmem:[%s2774_s9] sm:$0xff]  }
 0x6dd   :  { %v2089_v19 = vpop.f32.mrf.mxu1  ;;  %1667 = vmatpush1.bf16.msra.mxu1 %v2164_v47 }
 0x6de   :  { %1680 = vmatprep.subr.bf16.mxu1 %v2246_v8 }
 0x6df   :  { %v1355_v7 = vpop.f32.mrf.mxu1 }
 0x6e0   :  { %v1361_v9 = vpack.c.bf16 %v1355_v7, %v1355_v7 }
 0x6e1   :  { %v2100_v11 = vpop.f32.mrf.mxu1 }
 0x6e2   :  { %2105 = vmatmul.mubr.msk.bf16.vlgmr.msra.gmra.mxu0 %vm136_vm2, %v1361_v9  ;;  %v1879_v9 = vld [vmem:[%s2773_s8] ss:$0 sm:$0xff]  ;;  %vm1557_vm2 = vcmask 785408  }
 0x6e3   :  { %v1358_v12 = vpop.f32.mrf.mxu1  ;;  %2116 = vmatprep.mubr.msk.bf16.mxu0 %vm2234_vm0, %v2233_v1  ;;  %vm1554_vm0 = vcmask 523264  }
 0x6e5   :  { %v2101_v13 = vpop.f32.mrf.mxu1 }
 0x706   :  { %v1212_v15 = vpop.f32.mrf.mxu0 }
 0x707   :  { %v1213_v23 = vadd.f32 %v1212_v15, %v1169_v60 }
 0x708   :  { %v2082_v16 = vpop.f32.mrf.mxu0 }
 0x709   :  { %v2165_v16 = vld [vmem:[%s2774_s9 + $0x48] sm:$0xff]  }
 0x70a   :  { %v1215_v17 = vpop.f32.mrf.mxu0  ;;  %1681 = vmatpush2.bf16.msra.mxu1 %v2165_v16 }
 0x70b   :  { %1682 = vmatprep.subr.bf16.mxu1 %v2246_v8 }
 0x70c   :  { %v2083_v50 = vpop.f32.mrf.mxu0 }
 0x79a   :  { %v1305_v18 = vpop.f32.mrf.mxu0 }
 0x79b   :  { %v1311_v26 = vadd.f32 %v1305_v18, %v1213_v23 }
 0x79c   :  { %v2094_v20 = vpop.f32.mrf.mxu0 }
 0x79e   :  { %v1308_v22 = vpop.f32.mrf.mxu0 }
 0x79f   :  { %v2166_v22 = vld [vmem:[%s2774_s9 + $0x40] sm:$0xff]  }
 0x7a0   :  { %v2095_v24 = vpop.f32.mrf.mxu0  ;;  %1683 = vmatpush2.bf16.msra.mxu1 %v2166_v22 }
 0x7a2   :  { %v1399_v27 = vpop.f32.mrf.mxu0 }
 0x7a3   :  { %v1405_v29 = vadd.f32 %v1399_v27, %v1311_v26 }
 0x7a4   :  { %v2106_v30 = vpop.f32.mrf.mxu0 }
 0x7a5   :  { %v1414_v5 = vadd.f32 %v2601_v31, %v1405_v29  ;;  %v1489_v31 = vsel %vm1486_vm4, 1, %v2246_v8 }
 0x7a6   :  { %v1402_v33 = vpop.f32.mrf.mxu0 }
 0x7a7   :  { %v1416_v34 = vadd.f32 %v1414_v5, %v2349_v4  ;;  %v1469_v4 = vadd.s32 4294967294, %v2644_v39 }
 0x7a8   :  { %v2107_v14 = vpop.f32.mrf.mxu0 }
 0x7a9   :  { %v1420_v32 = vsel %vm78_vm1, %v1416_v34, 0.0  ;;  %vm1470_vm5 = vcmp.ge.s32.totalorder %v1469_v4, 0 }
 0x7aa   :  { %1421 = vadd.xlane.f32.xlu1 %v1420_v32  ;;  %v1473_v40 = vsel %vm1470_vm5, 1, %v2246_v8  ;;  %v2167_v32 = vld [vmem:[%s2776_s11 + $0x18] sm:$0xff]  }
 0x7ab   :  { %1475 = vperm.xlu0 %2139, %v1473_v40   ;;  %2109 = vmatpush3.bf16.msra.mxu0 %v2167_v32 }
 0x7ac   :  { %2110 = vmatprep.subr.bf16.mxu0 %v2233_v1 }
 0x7ae   :  { %1431 = vadd.xlane.f32.xlu1 %v1430_v37 }
 0x7bf   :  { %1491 = vperm.xlu1 %2138, %v1489_v31  }
 0x833   :  { %v1422_v41 = vpop.xlane.xlu1 %1421 }
 0x834   :  { %v1425_v42 = vmul.f32 0.03125, %v1422_v41 }
 0x836   :  { %v1427_v43 = vsub.f32 %v1416_v34, %v1425_v42  ;;  %v1476_v42 = vpop.permute.xlu0 %1475 }
 0x837   :  { %v1432_v57 = vpop.xlane.xlu1 %1431  ;;  %vm1477_vm15 = vcmp.eq.s32.totalorder %v1476_v42, 1  ;;  %v1899_v42 = vld [vmem:[%s2779_s14] ss:$0 sm:$0xff] }
 0x838   :  { %v1429_v3 = vmul.f32 %v1427_v43, %v1427_v43  ;;  %v1436_v58 = vmul.f32 0.03125, %v1432_v57 }
 0x83a   :  { %v1433_v44 = vsel %vm78_vm1, %v1429_v3, 0.0  ;;  %v1438_v59 = vadd.f32 1e-05, %v1436_v58 }
 0x83b   :  { %1434 = vadd.xlane.f32.xlu1 %v1433_v44  ;;  %v1492_v60 = vpop.permute.xlu1 %1491 }
 0x83c   :  { %2203 = vrsqrt.f32 %v1438_v59  ;;  %vm1493_vm12 = vcmp.eq.s32.totalorder %v1492_v60, 1 }
 0x849   :  { %v2204_v0 = vpop.eup %2203 }
 0x84a   :  { %v1442_v2 = vmul.f32 %v2204_v0, %v2636_v28  ;;  %v2170_v0 = vld [vmem:[%s2776_s11] sm:$0xff]  }
 0x84c   :  { %1507 = vperm.xlu1 %2138, %v1505_v48   ;;  %v1451_v19 = vmul.f32 %v1878_v6, %v1442_v2  ;;  %v1880_v2 = vld [vmem:[%s2775_s10] ss:$0 sm:$0xff] }
 0x84e   :  { %v2694_v13 = vadd.f32 %v1879_v9, %v1451_v19 }
 0x850   :  { %1523 = vperm.xlu1 %2138, %v1521_v49   ;;  %v1512_v18 = vrot.slane %v2694_v13, 2  ;;  %v1496_v8 = vrot.slane %v2694_v13, 1  ;;  %v1480_v30 = vrot.slane %v2694_v13, 7 }
 0x8c4   :  { %v1435_v61 = vpop.xlane.xlu1 %1434 }
 0x8c5   :  { %v1437_v62 = vmul.f32 0.03125, %v1435_v61 }
 0x8c7   :  { %v1439_v63 = vadd.f32 1e-05, %v1437_v62  ;;  %v2168_v62 = vld [vmem:[%s2776_s11 + $0x10] sm:$0xff]  }
 0x8c8   :  { %v1508_v11 = vpop.permute.xlu1 %1507  ;;  %2111 = vmatpush3.bf16.msra.mxu0 %v2168_v62 }
 0x8c9   :  { %2205 = vrsqrt.f32 %v1439_v63  ;;  %vm1509_vm13 = vcmp.eq.s32.totalorder %v1508_v11, 1  ;;  %2112 = vmatprep.subr.bf16.mxu0 %v2233_v1  ;;  %v2169_v63 = vld [vmem:[%s2776_s11 + $0x8] sm:$0xff]  }
 0x8cc   :  { %v1524_v50 = vpop.permute.xlu1 %1523  ;;  %2113 = vmatpush3.bf16.msra.mxu0 %v2169_v63 }
 0x8cd   :  { %vm1525_vm10 = vcmp.eq.s32.totalorder %v1524_v50, 1  ;;  %2114 = vmatprep.subr.bf16.mxu0 %v2233_v1  ;;  %v1892_v1 = vld [vmem:[%s2777_s12] ss:$0 sm:$0xff] }
 0x8d0   :  { %2115 = vmatpush3.bf16.msra.mxu0 %v2170_v0 }
 0x8d6   :  { %v2206_v7 = vpop.eup %2205 }
 0x8d7   :  { %v1443_v12 = vmul.f32 %v2206_v7, %v1427_v43  ;;  %v1464_v43 = vrot.slane %v2694_v13, 6 }
 0x8d9   :  { %v1452_v15 = vmul.f32 %v1878_v6, %v1443_v12 }
 0x8db   :  { %v2699_v17 = vadd.f32 %v1879_v9, %v1452_v15 }
 0x8dd   :  { %v1513_v20 = vrot.slane %v2699_v17, 2  ;;  %v2140_v21 = vpack.i.bf16 %v2699_v17, %v2694_v13  ;;  %v1497_v23 = vrot.slane %v2699_v17, 1  ;;  %v1481_v24 = vrot.slane %v2699_v17, 7 }
 0x8de   :  { %v1465_v41 = vrot.slane %v2699_v17, 6 }
 0x8df   :  { %v1515_v25 = vsel %vm1514_vm8, %v1512_v18, %v1513_v20  ;;  %v1516_v26 = vsel %vm1514_vm8, %v1513_v20, %v1512_v18  ;;  %2141 = vrot.lane.b32.xlu1 %v2140_v21, %s2243_s21  ;;  %v1499_v5 = vsel %vm1498_vm9, %v1496_v8, %v1497_v23  ;;  %v1500_v33 = vsel %vm1498_vm9, %v1497_v23, %v1496_v8  ;;  %s2247_s21 = smov 32  }
 0x8e0   :  { %v1526_v27 = vsel %vm1525_vm10, %v1515_v25, 0.0  ;;  %v1527_v29 = vsel %vm1525_vm10, %v1516_v26, 0.0  ;;  %v1483_v34 = vsel %vm1482_vm11, %v1480_v30, %v1481_v24  ;;  %v1484_v14 = vsel %vm1482_vm11, %v1481_v24, %v1480_v30 }
 0x8e1   :  { %v1561_v28 = vpack.c.bf16 %v1527_v29, %v1526_v27  ;;  %v1494_v36 = vsel %vm1493_vm12, %v1484_v14, 0.0  ;;  %v1495_v37 = vsel %vm1493_vm12, %v1483_v34, 0.0  ;;  %v1510_v35 = vsel %vm1509_vm13, %v1499_v5, 0.0 }
 0x8e2   :  { %v2145_v38 = vpack.i.bf16 %v1495_v37, %v1494_v36  ;;  %v1511_v31 = vsel %vm1509_vm13, %v1500_v33, 0.0  ;;  %v1467_v3 = vsel %vm1466_vm14, %v1464_v43, %v1465_v41  ;;  %v1468_v44 = vsel %vm1466_vm14, %v1465_v41, %v1464_v43 }
 0x8e3   :  { %1891 = vmatprep.mubr.msk.bf16.mxu1 %vm78_vm1, %v1561_v28  ;;  %v2150_v4 = vpack.i.bf16 %v1511_v31, %v1510_v35  ;;  %v1478_v49 = vsel %vm1477_vm15, %v1468_v44, 0.0  ;;  %v1479_v51 = vsel %vm1477_vm15, %v1467_v3, 0.0 }
 0x8e4   :  { %2146 = vrot.lane.b32.xlu1 %v2145_v38, %s2247_s21 }
 0x8e8   :  { %2151 = vrot.lane.b32.xlu1 %v2150_v4, %s2236_s27 }
 0x951   :  { %v2142_v40 = vpop.permute.xlu1 %2141 }
 0x952   :  { %v2144_v53 = vunpack.i.h.bf16 %v2142_v40  ;;  %v2143_v54 = vunpack.i.l.bf16 %v2142_v40  ;;  %v1898_v40 = vld [vmem:[%s2778_s13] ss:$0 sm:$0xff] }
 0x956   :  { %v2147_v45 = vpop.permute.xlu1 %2146 }
 0x957   :  { %v2149_v46 = vunpack.i.h.bf16 %v2147_v45  ;;  %v2148_v48 = vunpack.i.l.bf16 %v2147_v45 }
 0x959   :  { %v1553_v10 = vsel %vm78_vm1, %v1479_v51, %v2149_v46  ;;  %v1552_v52 = vsel %vm78_vm1, %v1478_v49, %v2148_v48 }
 0x95a   :  { %v2152_v39 = vpop.permute.xlu1 %2151  ;;  %v1555_v57 = vsel %vm1554_vm0, %v1552_v52, %v2143_v54  ;;  %v1556_v58 = vsel %vm1554_vm0, %v1553_v10, %v2144_v53 }
 0x95b   :  { %v2154_v55 = vunpack.i.h.bf16 %v2152_v39  ;;  %v2153_v56 = vunpack.i.l.bf16 %v2152_v39 }
 0x95d   :  { %v1558_v59 = vsel %vm1557_vm2, %v1555_v57, %v2153_v56  ;;  %v1559_v60 = vsel %vm1557_vm2, %v1556_v58, %v2154_v55 }
 0x95e   :  { %v1560_v61 = vpack.c.bf16 %v1559_v60, %v1558_v59 }
 0x960   :  { %1685 = vmatmul.mubr.bf16.vlgmr.msra.gmra.mxu1 %v1560_v61 }
 0xa20   :  { %v1686_v6 = vpop.f32.mrf.mxu1 }
 0xa21   :  { %v1687_v19 = vadd.f32 %v1880_v2, %v1686_v6 }
 0xa22   :  { %v1688_v47 = vpop.f32.mrf.mxu1 }
 0xa23   :  { %v1693_v12 = vmax.f32 %v1687_v19, 0.0 }
 0xa24   :  { %v1689_v7 = vpop.f32.mrf.mxu1 }
 0xa25   :  { %v1690_v9 = vadd.f32 %v1880_v2, %v1689_v7 }
 0xa26   :  { %v1691_v11 = vpop.f32.mrf.mxu1 }
 0xa27   :  { %v1694_v15 = vmax.f32 %v1690_v9, 0.0 }
 0xa29   :  { %v1695_v16 = vpack.c.bf16 %v1694_v15, %v1693_v12 }
 0xa2b   :  { %2117 = vmatmul.mubr.msk.bf16.vlgmr.msra.gmra.mxu0 %vm1554_vm0, %v1695_v16 }
 0xaeb   :  { %v1772_v50 = vpop.f32.mrf.mxu0 }
 0xaec   :  { %v1773_v18 = vadd.f32 %v1892_v1, %v1772_v50 }
 0xaed   :  { %v2118_v20 = vpop.f32.mrf.mxu0 }
 0xaee   :  { %v1779_v21 = vadd.f32 %v1773_v18, %v2694_v13 }
 0xaef   :  { %v1775_v22 = vpop.f32.mrf.mxu0 }
 0xaf0   :  { %v1776_v23 = vadd.f32 %v1892_v1, %v1775_v22  ;;  %v1781_v24 = vsel %vm78_vm1, %v1779_v21, 0.0 }
 0xaf1   :  { %1782 = vadd.xlane.f32.xlu1 %v1781_v24  ;;  %v2119_v25 = vpop.f32.mrf.mxu0 }
 0xaf2   :  { %v1780_v26 = vadd.f32 %v1776_v23, %v2699_v17 }
 0xaf4   :  { %v1784_v8 = vsel %vm78_vm1, %v1780_v26, 0.0 }
 0xaf5   :  { %1785 = vadd.xlane.f32.xlu0 %v1784_v8 }
 0xb7a   :  { %v1783_v27 = vpop.xlane.xlu1 %1782 }
 0xb7b   :  { %v1787_v29 = vmul.f32 0.03125, %v1783_v27 }
 0xb7d   :  { %v1789_v30 = vsub.f32 %v1779_v21, %v1787_v29 }
 0xb7e   :  { %v1786_v28 = vpop.xlane.xlu0 %1785 }
 0xb7f   :  { %v1788_v5 = vmul.f32 0.03125, %v1786_v28  ;;  %v1791_v33 = vmul.f32 %v1789_v30, %v1789_v30 }
 0xb81   :  { %v1790_v34 = vsub.f32 %v1780_v26, %v1788_v5  ;;  %v1793_v13 = vsel %vm78_vm1, %v1791_v33, 0.0 }
 0xb82   :  { %1794 = vadd.xlane.f32.xlu1 %v1793_v13 }
 0xb83   :  { %v1792_v14 = vmul.f32 %v1790_v34, %v1790_v34 }
 0xb85   :  { %v1796_v32 = vsel %vm78_vm1, %v1792_v14, 0.0 }
 0xb86   :  { %1797 = vadd.xlane.f32.xlu1 %v1796_v32 }
 0xc0b   :  { %v1795_v36 = vpop.xlane.xlu1 %1794 }
 0xc0c   :  { %v1799_v37 = vmul.f32 0.03125, %v1795_v36 }
 0xc0e   :  { %v1801_v17 = vadd.f32 1e-05, %v1799_v37 }
 0xc0f   :  { %v1798_v38 = vpop.xlane.xlu1 %1797 }
 0xc10   :  { %2207 = vrsqrt.f32 %v1801_v17  ;;  %v1800_v35 = vmul.f32 0.03125, %v1798_v38 }
 0xc12   :  { %v1802_v31 = vadd.f32 1e-05, %v1800_v35 }
 0xc14   :  { %2209 = vrsqrt.f32 %v1802_v31 }
 0xc1d   :  { %v2208_v4 = vpop.eup %2207 }
 0xc1e   :  { %v1805_v41 = vmul.f32 %v2208_v4, %v1789_v30 }
 0xc20   :  { %v1814_v43 = vmul.f32 %v1898_v40, %v1805_v41 }
 0xc21   :  { %v2210_v3 = vpop.eup %2209 }
 0xc22   :  { %v1806_v44 = vmul.f32 %v2210_v3, %v1790_v34  ;;  %v1823_v45 = vadd.f32 %v1899_v42, %v1814_v43 }
 0xc24   :  { %v1815_v46 = vmul.f32 %v1898_v40, %v1806_v44  ;;  %1825 = vst.msk [vmem:[#allocation2] sm:$0xff] %vm78_vm1, %v1823_v45 }
 0xc26   :  { %v1824_v48 = vadd.f32 %v1899_v42, %v1815_v46 }
 0xc28   :  { %1826 = vst.msk [vmem:[#allocation2 + $0x8] sm:$0xff] %vm78_vm1, %v1824_v48 }
 0xc29   :  { %2222 = shalt.err (!%p2219_p4)
}
 0xc2a   :  { %s2249_s13 = smov 128   ;;  %s2250_s14 = smov 8  }
 0xc2b   :  { %1838 = dma.vmem_to_hbm [thread:$0]  %s1833_s28, 256, %s2780_s15, [#allocation3], %s2249_s13, %s2249_s13, %s2250_s14  }
 0xc2c   :  { %2231 = dma.done.wait [#allocation3], 256  }
 0xc2d   :  { %2232 = vsyncadd [#allocation3], 4294967040 }
 0xc2e   :  { %1842 = vsyncpa [#allocation3], 1 }

</bundles_post_ra>
